<compile_context>
chip_gen: v7x
topology: tpu7x:2x2x1
jax: 0.10.0
libtpu: 0.0.40
codegen_flags: <defaults>
</compile_context>

<pallas_src>
import jax
import jax.numpy as jnp
from jax.experimental import pallas as pl
from jax.experimental.pallas import tpu as pltpu


# ------------------------------- fused Pallas kernel -------------------------------

def _make_fused_kernel(*, nb, nh, nw, tile_size, stride, crop_pre, emb_k, ctx_k):
    ts = tile_size
    oh = ts - 2                      # 3x3 valid conv output size per tile
    inv_area = 1.0 / float(oh * oh)
    L = nh * nw                      # tiles per image == sequence length

    def kernel(x_ref, w2_ref, b2_ref, we_ref, be_ref, wc_ref, bc_ref,
               emb_ref, ctx_ref):
        # x_ref : (NB, H, W, C) channels-last images for this block
        # w2_ref: (9*C, F)  flattened 3x3 Conv2d weight   b2_ref: (1, F)
        # we_ref: (emb_k*F, E) embedder Conv1d weight     be_ref: (1, E)
        # wc_ref: (ctx_k*E, Cc) contexter Conv1d weight   bc_ref: (1, Cc)
        # emb_ref: (NB, T_emb, E)   ctx_ref: (NB, T_ctx, Cc)
        x = x_ref[...]                                          # (NB, H, W, C)
        C = x.shape[-1]

        # ---- per-tile 3x3 conv + spatial mean: per-shift window sums, vectorized over
        #      every tile and every image in the block ----
        shift_means = []
        for di in range(3):
            # oh-row window sum for every tile-row start (all tiles / images at once)
            rsum = jnp.stack(
                [jnp.sum(x[:, ph * stride + di:ph * stride + di + oh, :, :], axis=1)
                 for ph in range(nh)], axis=1)                  # (NB, nh, W, C)
            for dj in range(3):
                wsum = jnp.stack(
                    [jnp.sum(rsum[:, :, pw * stride + dj:pw * stride + dj + oh, :], axis=2)
                     for pw in range(nw)], axis=2)              # (NB, nh, nw, C)
                shift_means.append(wsum.reshape(nb * L, C))
        # 9 shift window-sums stacked along channels (di-major, dj, then c) -> (NB*L, 9*C)
        pm = jnp.concatenate(shift_means, axis=1) * inv_area

        # single wide-K MXU call (K = 9*C) replaces 9 small per-tap dots
        feat = jnp.dot(pm, w2_ref[...],
                       preferred_element_type=jnp.float32) + b2_ref[...]   # (NB*L, F)
        feat3 = feat.reshape(nb, L, -1)                                    # (NB, L, F)
        # TODO(synk): num_image_residual_blocks fixed to 0 — ImageResidualBlock / FRN norm
        # is not defined in the reference snippet.

        # ---- embedder: valid Conv1d as one matmul with K = emb_k * F ----
        t_emb = L - emb_k + 1
        xe = jnp.concatenate([feat3[:, j:j + t_emb, :] for j in range(emb_k)], axis=2)
        x_emb = jnp.dot(xe.reshape(nb * t_emb, -1), we_ref[...],
                        preferred_element_type=jnp.float32) + be_ref[...]  # (NB*t_emb, E)
        E = x_emb.shape[-1]
        x_emb3 = x_emb.reshape(nb, t_emb, E)
        emb_ref[...] = x_emb3

        # ---- crop_pre zero left-pad + contexter Conv1d, fused in VMEM ----
        xp = jnp.concatenate(
            [jnp.zeros((nb, crop_pre, E), jnp.float32), x_emb3], axis=1)   # (NB, t_emb+pre, E)
        t_ctx = t_emb + crop_pre - ctx_k + 1
        xc = jnp.concatenate([xp[:, j:j + t_ctx, :] for j in range(ctx_k)], axis=2)
        x_ctx = jnp.dot(xc.reshape(nb * t_ctx, -1), wc_ref[...],
                        preferred_element_type=jnp.float32) + bc_ref[...]  # (NB*t_ctx, Cc)
        ctx_ref[...] = x_ctx.reshape(nb, t_ctx, -1)

    return kernel


def _pick_images_per_block(B, L, target_rows=128):
    """Largest divisor of B that keeps NB*L near the MXU M target while leaving
    >= 2 grid steps (both v7x TensorCores busy) whenever B >= 2."""
    cap = max(1, target_rows // max(L, 1))
    if B >= 2:
        cap = min(cap, B // 2)
    cap = max(cap, 1)
    nb = 1
    for d in range(1, cap + 1):
        if B % d == 0:
            nb = d
    return nb


def image_conv_cpc_forward(X, params, *, tile_size, emb_kernel=3, ctx_kernel=3):
    """X: (B, C, H, W) float32 (PyTorch NCHW).
    Returns (X_emb, X_ctx) in PyTorch (batch, channels, time) convention."""
    B, C, H, W = X.shape
    F = params['conv2d_w'].shape[-1]
    E = params['emb_w'].shape[-1]
    Cc = params['ctx_w'].shape[-1]
    stride = tile_size // 2
    nh = (H - tile_size) // stride + 1
    nw = (W - tile_size) // stride + 1
    L = nh * nw
    t_emb = L - emb_kernel + 1
    # ConvCPC.get_crops for valid convs: crop_pre = emb_crop//2 + ctx_reduction
    crop_pre = (emb_kernel - 1) // 2 + (ctx_kernel - 1)
    t_ctx = t_emb + crop_pre - ctx_kernel + 1

    # single layout change; NO unfold / overlapping-tile duplication in HBM
    x_nhwc = jnp.transpose(X, (0, 2, 3, 1))                      # (B, H, W, C)

    # flatten weights for the wide-K single-matmul formulation (tiny param reshapes)
    w2 = params['conv2d_w'].reshape(9 * C, F)
    we = params['emb_w'].reshape(emb_kernel * F, E)
    wc = params['ctx_w'].reshape(ctx_kernel * E, Cc)
    b2 = params['conv2d_b'].reshape(1, F)
    be = params['emb_b'].reshape(1, E)
    bc = params['ctx_b'].reshape(1, Cc)

    nb = _pick_images_per_block(B, L)
    kernel = _make_fused_kernel(nb=nb, nh=nh, nw=nw, tile_size=tile_size, stride=stride,
                                crop_pre=crop_pre, emb_k=emb_kernel, ctx_k=ctx_kernel)

    x_emb, x_ctx = pl.pallas_call(
        kernel,
        out_shape=(jax.ShapeDtypeStruct((B, t_emb, E), jnp.float32),
                   jax.ShapeDtypeStruct((B, t_ctx, Cc), jnp.float32)),
        grid=(B // nb,),
        in_specs=[
            pl.BlockSpec((nb, H, W, C), lambda b: (b, 0, 0, 0)),
            pl.BlockSpec((9 * C, F), lambda b: (0, 0)),
            pl.BlockSpec((1, F), lambda b: (0, 0)),
            pl.BlockSpec((emb_kernel * F, E), lambda b: (0, 0)),
            pl.BlockSpec((1, E), lambda b: (0, 0)),
            pl.BlockSpec((ctx_kernel * E, Cc), lambda b: (0, 0)),
            pl.BlockSpec((1, Cc), lambda b: (0, 0)),
        ],
        out_specs=(
            pl.BlockSpec((nb, t_emb, E), lambda b: (b, 0, 0)),
            pl.BlockSpec((nb, t_ctx, Cc), lambda b: (b, 0, 0)),
        ),
        compiler_params=pltpu.CompilerParams(
            dimension_semantics=("parallel",),
            # tiny blocks; stays far under v7x's 64 MiB VMEM / 32 MiB scoped default
            vmem_limit_bytes=32 * 1024 * 1024),
    )(x_nhwc, w2, b2, we, be, wc, bc)

    # back to PyTorch (batch, channels, time)
    return jnp.transpose(x_emb, (0, 2, 1)), jnp.transpose(x_ctx, (0, 2, 1))


# ----------------------------------- parameters -----------------------------------

def init_image_conv_cpc_params(key, *, num_image_channels, num_features,
                               num_embeddings, num_context,
                               conv2d_kernel=3, emb_kernel=3, ctx_kernel=3):
    """Deterministic kaiming_normal(mode='fan_out') weights, zero biases."""
    k1, k2, k3 = jax.random.split(key, 3)
    fan_out_2d = num_features * conv2d_kernel * conv2d_kernel
    conv2d_w = jax.random.normal(
        k1, (conv2d_kernel, conv2d_kernel, num_image_channels, num_features),
        jnp.float32) * jnp.sqrt(2.0 / fan_out_2d)
    conv2d_b = jnp.zeros((num_features,), jnp.float32)
    # TODO(synk): the reference Embedder / Contexter module definitions are not provided;
    # they are modelled as single valid Conv1d layers (features->embeddings and
    # embeddings->context, kernel 3), matching ConvCPC.__init__'s Conv1d kaiming/zero init.
    fan_out_emb = num_embeddings * emb_kernel
    emb_w = jax.random.normal(k2, (emb_kernel, num_features, num_embeddings),
                              jnp.float32) * jnp.sqrt(2.0 / fan_out_emb)
    emb_b = jnp.zeros((num_embeddings,), jnp.float32)
    fan_out_ctx = num_context * ctx_kernel
    ctx_w = jax.random.normal(k3, (ctx_kernel, num_embeddings, num_context),
                              jnp.float32) * jnp.sqrt(2.0 / fan_out_ctx)
    ctx_b = jnp.zeros((num_context,), jnp.float32)
    return dict(conv2d_w=conv2d_w, conv2d_b=conv2d_b,
                emb_w=emb_w, emb_b=emb_b, ctx_w=ctx_w, ctx_b=ctx_b)


# ------------------------------ pure-JAX reference ------------------------------

def _extract_tiles_ref(X, tile_size, stride):
    """Reference-only unfold mirroring torch.nn.functional.unfold + reshape."""
    B, C, H, W = X.shape
    nh = (H - tile_size) // stride + 1
    nw = (W - tile_size) // stride + 1
    tiles = []
    for ph in range(nh):
        for pw in range(nw):
            tiles.append(X[:, :, ph * stride:ph * stride + tile_size,
                           pw * stride:pw * stride + tile_size])
    return jnp.stack(tiles, axis=1)   # (B, L, C, ts, ts)


def _ref_forward(X, params, *, tile_size, emb_kernel=3, ctx_kernel=3):
    B, C, H, W = X.shape
    stride = tile_size // 2
    tiles = _extract_tiles_ref(X, tile_size, stride)
    L = tiles.shape[1]
    xt = tiles.reshape(B * L, C, tile_size, tile_size)
    w2 = params['conv2d_w']
    F = w2.shape[-1]
    oh = tile_size - 2
    conv = jnp.zeros((B * L, oh, oh, F), jnp.float32)
    for di in range(3):
        for dj in range(3):
            patch = xt[:, :, di:di + oh, dj:dj + oh]
            conv = conv + jnp.einsum('nchw,cf->nhwf', patch, w2[di, dj])
    conv = conv + params['conv2d_b']
    feat = conv.mean(axis=(1, 2))
    x_seq = feat.reshape(B, L, F)

    def conv1d_ref(x, w, b):
        k = w.shape[0]
        T_out = x.shape[1] - k + 1
        out = jnp.zeros((x.shape[0], T_out, w.shape[-1]), jnp.float32)
        for j in range(k):
            out = out + jnp.einsum('btc,co->bto', x[:, j:j + T_out, :], w[j])
        return out + b

    x_emb = conv1d_ref(x_seq, params['emb_w'], params['emb_b'])
    crop_pre = (emb_kernel - 1) // 2 + (ctx_kernel - 1)
    E = x_emb.shape[-1]
    x_emb_padded = jnp.concatenate(
        [jnp.zeros((B, crop_pre, E), jnp.float32), x_emb], axis=1)
    x_ctx = conv1d_ref(x_emb_padded, params['ctx_w'], params['ctx_b'])
    return x_emb.transpose(0, 2, 1), x_ctx.transpose(0, 2, 1)


# ------------------------------------ main ------------------------------------

if __name__ == "__main__":
    B, C, H, W = 2, 4, 16, 16
    tile_size = 8            # stride = tile_size // 2 = 4  ->  3x3 = 9 tiles / image
    num_features = 16
    num_embeddings = 32
    num_context = 32

    key = jax.random.PRNGKey(0)
    kx, kp = jax.random.split(key)
    X = jax.random.normal(kx, (B, C, H, W), jnp.float32)
    params = init_image_conv_cpc_params(
        kp, num_image_channels=C, num_features=num_features,
        num_embeddings=num_embeddings, num_context=num_context)

    x_emb, x_ctx = image_conv_cpc_forward(X, params, tile_size=tile_size)
    jax.block_until_ready((x_emb, x_ctx))

    r_emb, r_ctx = _ref_forward(X, params, tile_size=tile_size)
    assert x_emb.shape == r_emb.shape and x_ctx.shape == r_ctx.shape
    assert bool(jnp.allclose(x_emb, r_emb, atol=1e-4, rtol=1e-4))
    assert bool(jnp.allclose(x_ctx, r_ctx, atol=1e-4, rtol=1e-4))
    print("KERNEL_OK")
</pallas_src>

<mosaic_0001>
module attributes {stable_mosaic.version = 11 : i64} {
  func.func @kernel(%arg0: i32, %arg1: memref<1x16x16x4xf32, #tpu.memory_space<vmem>>, %arg2: memref<36x16xf32, #tpu.memory_space<vmem>>, %arg3: memref<1x16xf32, #tpu.memory_space<vmem>>, %arg4: memref<48x32xf32, #tpu.memory_space<vmem>>, %arg5: memref<1x32xf32, #tpu.memory_space<vmem>>, %arg6: memref<96x32xf32, #tpu.memory_space<vmem>>, %arg7: memref<1x32xf32, #tpu.memory_space<vmem>>, %arg8: memref<1x7x32xf32, #tpu.memory_space<vmem>>, %arg9: memref<1x8x32xf32, #tpu.memory_space<vmem>>) attributes {dimension_semantics = [#tpu.dimension_semantics<parallel>], iteration_bounds = array<i64: 2>, scalar_prefetch = 0 : i64, scratch_operands = 0 : i64, tpu.core_type = #tpu.core_type<tc>, window_params = [{transform_indices = @transform_0, window_bounds = array<i64: 1, 16, 16, 4>}, {pipeline_mode = #tpu.pipeline_mode<synchronous>, transform_indices = @transform_1, window_bounds = array<i64: 36, 16>}, {pipeline_mode = #tpu.pipeline_mode<synchronous>, transform_indices = @transform_2, window_bounds = array<i64: 1, 16>}, {pipeline_mode = #tpu.pipeline_mode<synchronous>, transform_indices = @transform_3, window_bounds = array<i64: 48, 32>}, {pipeline_mode = #tpu.pipeline_mode<synchronous>, transform_indices = @transform_4, window_bounds = array<i64: 1, 32>}, {pipeline_mode = #tpu.pipeline_mode<synchronous>, transform_indices = @transform_5, window_bounds = array<i64: 96, 32>}, {pipeline_mode = #tpu.pipeline_mode<synchronous>, transform_indices = @transform_6, window_bounds = array<i64: 1, 32>}, {transform_indices = @transform_7, window_bounds = array<i64: 1, 7, 32>}, {transform_indices = @transform_8, window_bounds = array<i64: 1, 8, 32>}]} {
    %c0 = arith.constant 0 : index
    %c0_0 = arith.constant 0 : index
    %c0_1 = arith.constant 0 : index
    %c0_2 = arith.constant 0 : index
    %0 = vector.load %arg1[%c0, %c0_0, %c0_1, %c0_2] : memref<1x16x16x4xf32, #tpu.memory_space<vmem>>, vector<1x16x16x4xf32>
    %1 = vector.extract_strided_slice %0 {offsets = [0, 0, 0, 0], sizes = [1, 6, 16, 4], strides = [1, 1, 1, 1]} : vector<1x16x16x4xf32> to vector<1x6x16x4xf32>
    %cst = arith.constant dense<0.000000e+00> : vector<1x16x4xf32>
    %2 = vector.multi_reduction <add>, %1, %cst [1] : vector<1x6x16x4xf32> to vector<1x16x4xf32>
    %3 = vector.extract_strided_slice %0 {offsets = [0, 4, 0, 0], sizes = [1, 6, 16, 4], strides = [1, 1, 1, 1]} : vector<1x16x16x4xf32> to vector<1x6x16x4xf32>
    %cst_3 = arith.constant dense<0.000000e+00> : vector<1x16x4xf32>
    %4 = vector.multi_reduction <add>, %3, %cst_3 [1] : vector<1x6x16x4xf32> to vector<1x16x4xf32>
    %5 = vector.extract_strided_slice %0 {offsets = [0, 8, 0, 0], sizes = [1, 6, 16, 4], strides = [1, 1, 1, 1]} : vector<1x16x16x4xf32> to vector<1x6x16x4xf32>
    %cst_4 = arith.constant dense<0.000000e+00> : vector<1x16x4xf32>
    %6 = vector.multi_reduction <add>, %5, %cst_4 [1] : vector<1x6x16x4xf32> to vector<1x16x4xf32>
    %7 = vector.shape_cast %2 : vector<1x16x4xf32> to vector<1x1x16x4xf32>
    %8 = vector.shape_cast %4 : vector<1x16x4xf32> to vector<1x1x16x4xf32>
    %9 = vector.shape_cast %6 : vector<1x16x4xf32> to vector<1x1x16x4xf32>
    %10 = tpu.concatenate %7, %8, %9 in 1 : vector<1x1x16x4xf32>, vector<1x1x16x4xf32>, vector<1x1x16x4xf32> -> vector<1x3x16x4xf32>
    %11 = vector.extract_strided_slice %10 {offsets = [0, 0, 0, 0], sizes = [1, 3, 6, 4], strides = [1, 1, 1, 1]} : vector<1x3x16x4xf32> to vector<1x3x6x4xf32>
    %cst_5 = arith.constant dense<0.000000e+00> : vector<1x3x4xf32>
    %12 = vector.multi_reduction <add>, %11, %cst_5 [2] : vector<1x3x6x4xf32> to vector<1x3x4xf32>
    %13 = vector.extract_strided_slice %10 {offsets = [0, 0, 4, 0], sizes = [1, 3, 6, 4], strides = [1, 1, 1, 1]} : vector<1x3x16x4xf32> to vector<1x3x6x4xf32>
    %cst_6 = arith.constant dense<0.000000e+00> : vector<1x3x4xf32>
    %14 = vector.multi_reduction <add>, %13, %cst_6 [2] : vector<1x3x6x4xf32> to vector<1x3x4xf32>
    %15 = vector.extract_strided_slice %10 {offsets = [0, 0, 8, 0], sizes = [1, 3, 6, 4], strides = [1, 1, 1, 1]} : vector<1x3x16x4xf32> to vector<1x3x6x4xf32>
    %cst_7 = arith.constant dense<0.000000e+00> : vector<1x3x4xf32>
    %16 = vector.multi_reduction <add>, %15, %cst_7 [2] : vector<1x3x6x4xf32> to vector<1x3x4xf32>
    %17 = vector.shape_cast %12 : vector<1x3x4xf32> to vector<1x3x1x4xf32>
    %18 = vector.shape_cast %14 : vector<1x3x4xf32> to vector<1x3x1x4xf32>
    %19 = vector.shape_cast %16 : vector<1x3x4xf32> to vector<1x3x1x4xf32>
    %20 = tpu.concatenate %17, %18, %19 in 2 : vector<1x3x1x4xf32>, vector<1x3x1x4xf32>, vector<1x3x1x4xf32> -> vector<1x3x3x4xf32>
    %21 = vector.shape_cast %20 : vector<1x3x3x4xf32> to vector<9x4xf32>
    %22 = vector.extract_strided_slice %10 {offsets = [0, 0, 1, 0], sizes = [1, 3, 6, 4], strides = [1, 1, 1, 1]} : vector<1x3x16x4xf32> to vector<1x3x6x4xf32>
    %cst_8 = arith.constant dense<0.000000e+00> : vector<1x3x4xf32>
    %23 = vector.multi_reduction <add>, %22, %cst_8 [2] : vector<1x3x6x4xf32> to vector<1x3x4xf32>
    %24 = vector.extract_strided_slice %10 {offsets = [0, 0, 5, 0], sizes = [1, 3, 6, 4], strides = [1, 1, 1, 1]} : vector<1x3x16x4xf32> to vector<1x3x6x4xf32>
    %cst_9 = arith.constant dense<0.000000e+00> : vector<1x3x4xf32>
    %25 = vector.multi_reduction <add>, %24, %cst_9 [2] : vector<1x3x6x4xf32> to vector<1x3x4xf32>
    %26 = vector.extract_strided_slice %10 {offsets = [0, 0, 9, 0], sizes = [1, 3, 6, 4], strides = [1, 1, 1, 1]} : vector<1x3x16x4xf32> to vector<1x3x6x4xf32>
    %cst_10 = arith.constant dense<0.000000e+00> : vector<1x3x4xf32>
    %27 = vector.multi_reduction <add>, %26, %cst_10 [2] : vector<1x3x6x4xf32> to vector<1x3x4xf32>
    %28 = vector.shape_cast %23 : vector<1x3x4xf32> to vector<1x3x1x4xf32>
    %29 = vector.shape_cast %25 : vector<1x3x4xf32> to vector<1x3x1x4xf32>
    %30 = vector.shape_cast %27 : vector<1x3x4xf32> to vector<1x3x1x4xf32>
    %31 = tpu.concatenate %28, %29, %30 in 2 : vector<1x3x1x4xf32>, vector<1x3x1x4xf32>, vector<1x3x1x4xf32> -> vector<1x3x3x4xf32>
    %32 = vector.shape_cast %31 : vector<1x3x3x4xf32> to vector<9x4xf32>
    %33 = vector.extract_strided_slice %10 {offsets = [0, 0, 2, 0], sizes = [1, 3, 6, 4], strides = [1, 1, 1, 1]} : vector<1x3x16x4xf32> to vector<1x3x6x4xf32>
    %cst_11 = arith.constant dense<0.000000e+00> : vector<1x3x4xf32>
    %34 = vector.multi_reduction <add>, %33, %cst_11 [2] : vector<1x3x6x4xf32> to vector<1x3x4xf32>
    %35 = vector.extract_strided_slice %10 {offsets = [0, 0, 6, 0], sizes = [1, 3, 6, 4], strides = [1, 1, 1, 1]} : vector<1x3x16x4xf32> to vector<1x3x6x4xf32>
    %cst_12 = arith.constant dense<0.000000e+00> : vector<1x3x4xf32>
    %36 = vector.multi_reduction <add>, %35, %cst_12 [2] : vector<1x3x6x4xf32> to vector<1x3x4xf32>
    %37 = vector.extract_strided_slice %10 {offsets = [0, 0, 10, 0], sizes = [1, 3, 6, 4], strides = [1, 1, 1, 1]} : vector<1x3x16x4xf32> to vector<1x3x6x4xf32>
    %cst_13 = arith.constant dense<0.000000e+00> : vector<1x3x4xf32>
    %38 = vector.multi_reduction <add>, %37, %cst_13 [2] : vector<1x3x6x4xf32> to vector<1x3x4xf32>
    %39 = vector.shape_cast %34 : vector<1x3x4xf32> to vector<1x3x1x4xf32>
    %40 = vector.shape_cast %36 : vector<1x3x4xf32> to vector<1x3x1x4xf32>
    %41 = vector.shape_cast %38 : vector<1x3x4xf32> to vector<1x3x1x4xf32>
    %42 = tpu.concatenate %39, %40, %41 in 2 : vector<1x3x1x4xf32>, vector<1x3x1x4xf32>, vector<1x3x1x4xf32> -> vector<1x3x3x4xf32>
    %43 = vector.shape_cast %42 : vector<1x3x3x4xf32> to vector<9x4xf32>
    %44 = vector.extract_strided_slice %0 {offsets = [0, 1, 0, 0], sizes = [1, 6, 16, 4], strides = [1, 1, 1, 1]} : vector<1x16x16x4xf32> to vector<1x6x16x4xf32>
    %cst_14 = arith.constant dense<0.000000e+00> : vector<1x16x4xf32>
    %45 = vector.multi_reduction <add>, %44, %cst_14 [1] : vector<1x6x16x4xf32> to vector<1x16x4xf32>
    %46 = vector.extract_strided_slice %0 {offsets = [0, 5, 0, 0], sizes = [1, 6, 16, 4], strides = [1, 1, 1, 1]} : vector<1x16x16x4xf32> to vector<1x6x16x4xf32>
    %cst_15 = arith.constant dense<0.000000e+00> : vector<1x16x4xf32>
    %47 = vector.multi_reduction <add>, %46, %cst_15 [1] : vector<1x6x16x4xf32> to vector<1x16x4xf32>
    %48 = vector.extract_strided_slice %0 {offsets = [0, 9, 0, 0], sizes = [1, 6, 16, 4], strides = [1, 1, 1, 1]} : vector<1x16x16x4xf32> to vector<1x6x16x4xf32>
    %cst_16 = arith.constant dense<0.000000e+00> : vector<1x16x4xf32>
    %49 = vector.multi_reduction <add>, %48, %cst_16 [1] : vector<1x6x16x4xf32> to vector<1x16x4xf32>
    %50 = vector.shape_cast %45 : vector<1x16x4xf32> to vector<1x1x16x4xf32>
    %51 = vector.shape_cast %47 : vector<1x16x4xf32> to vector<1x1x16x4xf32>
    %52 = vector.shape_cast %49 : vector<1x16x4xf32> to vector<1x1x16x4xf32>
    %53 = tpu.concatenate %50, %51, %52 in 1 : vector<1x1x16x4xf32>, vector<1x1x16x4xf32>, vector<1x1x16x4xf32> -> vector<1x3x16x4xf32>
    %54 = vector.extract_strided_slice %53 {offsets = [0, 0, 0, 0], sizes = [1, 3, 6, 4], strides = [1, 1, 1, 1]} : vector<1x3x16x4xf32> to vector<1x3x6x4xf32>
    %cst_17 = arith.constant dense<0.000000e+00> : vector<1x3x4xf32>
    %55 = vector.multi_reduction <add>, %54, %cst_17 [2] : vector<1x3x6x4xf32> to vector<1x3x4xf32>
    %56 = vector.extract_strided_slice %53 {offsets = [0, 0, 4, 0], sizes = [1, 3, 6, 4], strides = [1, 1, 1, 1]} : vector<1x3x16x4xf32> to vector<1x3x6x4xf32>
    %cst_18 = arith.constant dense<0.000000e+00> : vector<1x3x4xf32>
    %57 = vector.multi_reduction <add>, %56, %cst_18 [2] : vector<1x3x6x4xf32> to vector<1x3x4xf32>
    %58 = vector.extract_strided_slice %53 {offsets = [0, 0, 8, 0], sizes = [1, 3, 6, 4], strides = [1, 1, 1, 1]} : vector<1x3x16x4xf32> to vector<1x3x6x4xf32>
    %cst_19 = arith.constant dense<0.000000e+00> : vector<1x3x4xf32>
    %59 = vector.multi_reduction <add>, %58, %cst_19 [2] : vector<1x3x6x4xf32> to vector<1x3x4xf32>
    %60 = vector.shape_cast %55 : vector<1x3x4xf32> to vector<1x3x1x4xf32>
    %61 = vector.shape_cast %57 : vector<1x3x4xf32> to vector<1x3x1x4xf32>
    %62 = vector.shape_cast %59 : vector<1x3x4xf32> to vector<1x3x1x4xf32>
    %63 = tpu.concatenate %60, %61, %62 in 2 : vector<1x3x1x4xf32>, vector<1x3x1x4xf32>, vector<1x3x1x4xf32> -> vector<1x3x3x4xf32>
    %64 = vector.shape_cast %63 : vector<1x3x3x4xf32> to vector<9x4xf32>
    %65 = vector.extract_strided_slice %53 {offsets = [0, 0, 1, 0], sizes = [1, 3, 6, 4], strides = [1, 1, 1, 1]} : vector<1x3x16x4xf32> to vector<1x3x6x4xf32>
    %cst_20 = arith.constant dense<0.000000e+00> : vector<1x3x4xf32>
    %66 = vector.multi_reduction <add>, %65, %cst_20 [2] : vector<1x3x6x4xf32> to vector<1x3x4xf32>
    %67 = vector.extract_strided_slice %53 {offsets = [0, 0, 5, 0], sizes = [1, 3, 6, 4], strides = [1, 1, 1, 1]} : vector<1x3x16x4xf32> to vector<1x3x6x4xf32>
    %cst_21 = arith.constant dense<0.000000e+00> : vector<1x3x4xf32>
    %68 = vector.multi_reduction <add>, %67, %cst_21 [2] : vector<1x3x6x4xf32> to vector<1x3x4xf32>
    %69 = vector.extract_strided_slice %53 {offsets = [0, 0, 9, 0], sizes = [1, 3, 6, 4], strides = [1, 1, 1, 1]} : vector<1x3x16x4xf32> to vector<1x3x6x4xf32>
    %cst_22 = arith.constant dense<0.000000e+00> : vector<1x3x4xf32>
    %70 = vector.multi_reduction <add>, %69, %cst_22 [2] : vector<1x3x6x4xf32> to vector<1x3x4xf32>
    %71 = vector.shape_cast %66 : vector<1x3x4xf32> to vector<1x3x1x4xf32>
    %72 = vector.shape_cast %68 : vector<1x3x4xf32> to vector<1x3x1x4xf32>
    %73 = vector.shape_cast %70 : vector<1x3x4xf32> to vector<1x3x1x4xf32>
    %74 = tpu.concatenate %71, %72, %73 in 2 : vector<1x3x1x4xf32>, vector<1x3x1x4xf32>, vector<1x3x1x4xf32> -> vector<1x3x3x4xf32>
    %75 = vector.shape_cast %74 : vector<1x3x3x4xf32> to vector<9x4xf32>
    %76 = vector.extract_strided_slice %53 {offsets = [0, 0, 2, 0], sizes = [1, 3, 6, 4], strides = [1, 1, 1, 1]} : vector<1x3x16x4xf32> to vector<1x3x6x4xf32>
    %cst_23 = arith.constant dense<0.000000e+00> : vector<1x3x4xf32>
    %77 = vector.multi_reduction <add>, %76, %cst_23 [2] : vector<1x3x6x4xf32> to vector<1x3x4xf32>
    %78 = vector.extract_strided_slice %53 {offsets = [0, 0, 6, 0], sizes = [1, 3, 6, 4], strides = [1, 1, 1, 1]} : vector<1x3x16x4xf32> to vector<1x3x6x4xf32>
    %cst_24 = arith.constant dense<0.000000e+00> : vector<1x3x4xf32>
    %79 = vector.multi_reduction <add>, %78, %cst_24 [2] : vector<1x3x6x4xf32> to vector<1x3x4xf32>
    %80 = vector.extract_strided_slice %53 {offsets = [0, 0, 10, 0], sizes = [1, 3, 6, 4], strides = [1, 1, 1, 1]} : vector<1x3x16x4xf32> to vector<1x3x6x4xf32>
    %cst_25 = arith.constant dense<0.000000e+00> : vector<1x3x4xf32>
    %81 = vector.multi_reduction <add>, %80, %cst_25 [2] : vector<1x3x6x4xf32> to vector<1x3x4xf32>
    %82 = vector.shape_cast %77 : vector<1x3x4xf32> to vector<1x3x1x4xf32>
    %83 = vector.shape_cast %79 : vector<1x3x4xf32> to vector<1x3x1x4xf32>
    %84 = vector.shape_cast %81 : vector<1x3x4xf32> to vector<1x3x1x4xf32>
    %85 = tpu.concatenate %82, %83, %84 in 2 : vector<1x3x1x4xf32>, vector<1x3x1x4xf32>, vector<1x3x1x4xf32> -> vector<1x3x3x4xf32>
    %86 = vector.shape_cast %85 : vector<1x3x3x4xf32> to vector<9x4xf32>
    %87 = vector.extract_strided_slice %0 {offsets = [0, 2, 0, 0], sizes = [1, 6, 16, 4], strides = [1, 1, 1, 1]} : vector<1x16x16x4xf32> to vector<1x6x16x4xf32>
    %cst_26 = arith.constant dense<0.000000e+00> : vector<1x16x4xf32>
    %88 = vector.multi_reduction <add>, %87, %cst_26 [1] : vector<1x6x16x4xf32> to vector<1x16x4xf32>
    %89 = vector.extract_strided_slice %0 {offsets = [0, 6, 0, 0], sizes = [1, 6, 16, 4], strides = [1, 1, 1, 1]} : vector<1x16x16x4xf32> to vector<1x6x16x4xf32>
    %cst_27 = arith.constant dense<0.000000e+00> : vector<1x16x4xf32>
    %90 = vector.multi_reduction <add>, %89, %cst_27 [1] : vector<1x6x16x4xf32> to vector<1x16x4xf32>
    %91 = vector.extract_strided_slice %0 {offsets = [0, 10, 0, 0], sizes = [1, 6, 16, 4], strides = [1, 1, 1, 1]} : vector<1x16x16x4xf32> to vector<1x6x16x4xf32>
    %cst_28 = arith.constant dense<0.000000e+00> : vector<1x16x4xf32>
    %92 = vector.multi_reduction <add>, %91, %cst_28 [1] : vector<1x6x16x4xf32> to vector<1x16x4xf32>
    %93 = vector.shape_cast %88 : vector<1x16x4xf32> to vector<1x1x16x4xf32>
    %94 = vector.shape_cast %90 : vector<1x16x4xf32> to vector<1x1x16x4xf32>
    %95 = vector.shape_cast %92 : vector<1x16x4xf32> to vector<1x1x16x4xf32>
    %96 = tpu.concatenate %93, %94, %95 in 1 : vector<1x1x16x4xf32>, vector<1x1x16x4xf32>, vector<1x1x16x4xf32> -> vector<1x3x16x4xf32>
    %97 = vector.extract_strided_slice %96 {offsets = [0, 0, 0, 0], sizes = [1, 3, 6, 4], strides = [1, 1, 1, 1]} : vector<1x3x16x4xf32> to vector<1x3x6x4xf32>
    %cst_29 = arith.constant dense<0.000000e+00> : vector<1x3x4xf32>
    %98 = vector.multi_reduction <add>, %97, %cst_29 [2] : vector<1x3x6x4xf32> to vector<1x3x4xf32>
    %99 = vector.extract_strided_slice %96 {offsets = [0, 0, 4, 0], sizes = [1, 3, 6, 4], strides = [1, 1, 1, 1]} : vector<1x3x16x4xf32> to vector<1x3x6x4xf32>
    %cst_30 = arith.constant dense<0.000000e+00> : vector<1x3x4xf32>
    %100 = vector.multi_reduction <add>, %99, %cst_30 [2] : vector<1x3x6x4xf32> to vector<1x3x4xf32>
    %101 = vector.extract_strided_slice %96 {offsets = [0, 0, 8, 0], sizes = [1, 3, 6, 4], strides = [1, 1, 1, 1]} : vector<1x3x16x4xf32> to vector<1x3x6x4xf32>
    %cst_31 = arith.constant dense<0.000000e+00> : vector<1x3x4xf32>
    %102 = vector.multi_reduction <add>, %101, %cst_31 [2] : vector<1x3x6x4xf32> to vector<1x3x4xf32>
    %103 = vector.shape_cast %98 : vector<1x3x4xf32> to vector<1x3x1x4xf32>
    %104 = vector.shape_cast %100 : vector<1x3x4xf32> to vector<1x3x1x4xf32>
    %105 = vector.shape_cast %102 : vector<1x3x4xf32> to vector<1x3x1x4xf32>
    %106 = tpu.concatenate %103, %104, %105 in 2 : vector<1x3x1x4xf32>, vector<1x3x1x4xf32>, vector<1x3x1x4xf32> -> vector<1x3x3x4xf32>
    %107 = vector.shape_cast %106 : vector<1x3x3x4xf32> to vector<9x4xf32>
    %108 = vector.extract_strided_slice %96 {offsets = [0, 0, 1, 0], sizes = [1, 3, 6, 4], strides = [1, 1, 1, 1]} : vector<1x3x16x4xf32> to vector<1x3x6x4xf32>
    %cst_32 = arith.constant dense<0.000000e+00> : vector<1x3x4xf32>
    %109 = vector.multi_reduction <add>, %108, %cst_32 [2] : vector<1x3x6x4xf32> to vector<1x3x4xf32>
    %110 = vector.extract_strided_slice %96 {offsets = [0, 0, 5, 0], sizes = [1, 3, 6, 4], strides = [1, 1, 1, 1]} : vector<1x3x16x4xf32> to vector<1x3x6x4xf32>
    %cst_33 = arith.constant dense<0.000000e+00> : vector<1x3x4xf32>
    %111 = vector.multi_reduction <add>, %110, %cst_33 [2] : vector<1x3x6x4xf32> to vector<1x3x4xf32>
    %112 = vector.extract_strided_slice %96 {offsets = [0, 0, 9, 0], sizes = [1, 3, 6, 4], strides = [1, 1, 1, 1]} : vector<1x3x16x4xf32> to vector<1x3x6x4xf32>
    %cst_34 = arith.constant dense<0.000000e+00> : vector<1x3x4xf32>
    %113 = vector.multi_reduction <add>, %112, %cst_34 [2] : vector<1x3x6x4xf32> to vector<1x3x4xf32>
    %114 = vector.shape_cast %109 : vector<1x3x4xf32> to vector<1x3x1x4xf32>
    %115 = vector.shape_cast %111 : vector<1x3x4xf32> to vector<1x3x1x4xf32>
    %116 = vector.shape_cast %113 : vector<1x3x4xf32> to vector<1x3x1x4xf32>
    %117 = tpu.concatenate %114, %115, %116 in 2 : vector<1x3x1x4xf32>, vector<1x3x1x4xf32>, vector<1x3x1x4xf32> -> vector<1x3x3x4xf32>
    %118 = vector.shape_cast %117 : vector<1x3x3x4xf32> to vector<9x4xf32>
    %119 = vector.extract_strided_slice %96 {offsets = [0, 0, 2, 0], sizes = [1, 3, 6, 4], strides = [1, 1, 1, 1]} : vector<1x3x16x4xf32> to vector<1x3x6x4xf32>
    %cst_35 = arith.constant dense<0.000000e+00> : vector<1x3x4xf32>
    %120 = vector.multi_reduction <add>, %119, %cst_35 [2] : vector<1x3x6x4xf32> to vector<1x3x4xf32>
    %121 = vector.extract_strided_slice %96 {offsets = [0, 0, 6, 0], sizes = [1, 3, 6, 4], strides = [1, 1, 1, 1]} : vector<1x3x16x4xf32> to vector<1x3x6x4xf32>
    %cst_36 = arith.constant dense<0.000000e+00> : vector<1x3x4xf32>
    %122 = vector.multi_reduction <add>, %121, %cst_36 [2] : vector<1x3x6x4xf32> to vector<1x3x4xf32>
    %123 = vector.extract_strided_slice %96 {offsets = [0, 0, 10, 0], sizes = [1, 3, 6, 4], strides = [1, 1, 1, 1]} : vector<1x3x16x4xf32> to vector<1x3x6x4xf32>
    %cst_37 = arith.constant dense<0.000000e+00> : vector<1x3x4xf32>
    %124 = vector.multi_reduction <add>, %123, %cst_37 [2] : vector<1x3x6x4xf32> to vector<1x3x4xf32>
    %125 = vector.shape_cast %120 : vector<1x3x4xf32> to vector<1x3x1x4xf32>
    %126 = vector.shape_cast %122 : vector<1x3x4xf32> to vector<1x3x1x4xf32>
    %127 = vector.shape_cast %124 : vector<1x3x4xf32> to vector<1x3x1x4xf32>
    %128 = tpu.concatenate %125, %126, %127 in 2 : vector<1x3x1x4xf32>, vector<1x3x1x4xf32>, vector<1x3x1x4xf32> -> vector<1x3x3x4xf32>
    %129 = vector.shape_cast %128 : vector<1x3x3x4xf32> to vector<9x4xf32>
    %130 = tpu.concatenate %21, %32, %43, %64, %75, %86, %107, %118, %129 in 1 : vector<9x4xf32>, vector<9x4xf32>, vector<9x4xf32>, vector<9x4xf32>, vector<9x4xf32>, vector<9x4xf32>, vector<9x4xf32>, vector<9x4xf32>, vector<9x4xf32> -> vector<9x36xf32>
    %cst_38 = arith.constant 0.027777778 : f32
    %131 = vector.broadcast %cst_38 : f32 to vector<9x36xf32>
    %132 = arith.mulf %130, %131 : vector<9x36xf32>
    %c0_39 = arith.constant 0 : index
    %c0_40 = arith.constant 0 : index
    %133 = vector.load %arg2[%c0_39, %c0_40] : memref<36x16xf32, #tpu.memory_space<vmem>>, vector<36x16xf32>
    %cst_41 = arith.constant dense<0.000000e+00> : vector<9x16xf32>
    %134 = tpu.matmul %132, %133, %cst_41 {dimension_numbers = #tpu.dot_dimension_numbers<[1], [0], [0], [1], [0, 0, 1, 1], [], []>} : vector<9x36xf32>, vector<36x16xf32>, vector<9x16xf32> -> vector<9x16xf32>
    %c0_42 = arith.constant 0 : index
    %c0_43 = arith.constant 0 : index
    %135 = vector.load %arg3[%c0_42, %c0_43] : memref<1x16xf32, #tpu.memory_space<vmem>>, vector<1x16xf32>
    %136 = vector.broadcast %135 : vector<1x16xf32> to vector<9x16xf32>
    %137 = arith.addf %134, %136 : vector<9x16xf32>
    %138 = vector.shape_cast %137 : vector<9x16xf32> to vector<1x9x16xf32>
    %139 = vector.extract_strided_slice %138 {offsets = [0, 0, 0], sizes = [1, 7, 16], strides = [1, 1, 1]} : vector<1x9x16xf32> to vector<1x7x16xf32>
    %140 = vector.extract_strided_slice %138 {offsets = [0, 1, 0], sizes = [1, 7, 16], strides = [1, 1, 1]} : vector<1x9x16xf32> to vector<1x7x16xf32>
    %141 = vector.extract_strided_slice %138 {offsets = [0, 2, 0], sizes = [1, 7, 16], strides = [1, 1, 1]} : vector<1x9x16xf32> to vector<1x7x16xf32>
    %142 = tpu.concatenate %139, %140, %141 in 2 : vector<1x7x16xf32>, vector<1x7x16xf32>, vector<1x7x16xf32> -> vector<1x7x48xf32>
    %143 = vector.shape_cast %142 : vector<1x7x48xf32> to vector<7x48xf32>
    %c0_44 = arith.constant 0 : index
    %c0_45 = arith.constant 0 : index
    %144 = vector.load %arg4[%c0_44, %c0_45] : memref<48x32xf32, #tpu.memory_space<vmem>>, vector<48x32xf32>
    %cst_46 = arith.constant dense<0.000000e+00> : vector<7x32xf32>
    %145 = tpu.matmul %143, %144, %cst_46 {dimension_numbers = #tpu.dot_dimension_numbers<[1], [0], [0], [1], [0, 0, 1, 1], [], []>} : vector<7x48xf32>, vector<48x32xf32>, vector<7x32xf32> -> vector<7x32xf32>
    %c0_47 = arith.constant 0 : index
    %c0_48 = arith.constant 0 : index
    %146 = vector.load %arg5[%c0_47, %c0_48] : memref<1x32xf32, #tpu.memory_space<vmem>>, vector<1x32xf32>
    %147 = vector.broadcast %146 : vector<1x32xf32> to vector<7x32xf32>
    %148 = arith.addf %145, %147 : vector<7x32xf32>
    %149 = vector.shape_cast %148 : vector<7x32xf32> to vector<1x7x32xf32>
    %c0_49 = arith.constant 0 : index
    %c0_50 = arith.constant 0 : index
    %c0_51 = arith.constant 0 : index
    %150 = vector.load %arg8[%c0_49, %c0_50, %c0_51] : memref<1x7x32xf32, #tpu.memory_space<vmem>>, vector<1x7x32xf32>
    tpu.vector_store %arg8[%c0_49, %c0_50, %c0_51], %149 {strides = array<i32>} : memref<1x7x32xf32, #tpu.memory_space<vmem>>, vector<1x7x32xf32>,
    %cst_52 = arith.constant 0.000000e+00 : f32
    %151 = vector.broadcast %cst_52 : f32 to vector<1x3x32xf32>
    %152 = tpu.concatenate %151, %149 in 1 : vector<1x3x32xf32>, vector<1x7x32xf32> -> vector<1x10x32xf32>
    %153 = vector.extract_strided_slice %152 {offsets = [0, 0, 0], sizes = [1, 8, 32], strides = [1, 1, 1]} : vector<1x10x32xf32> to vector<1x8x32xf32>
    %154 = vector.extract_strided_slice %152 {offsets = [0, 1, 0], sizes = [1, 8, 32], strides = [1, 1, 1]} : vector<1x10x32xf32> to vector<1x8x32xf32>
    %155 = vector.extract_strided_slice %152 {offsets = [0, 2, 0], sizes = [1, 8, 32], strides = [1, 1, 1]} : vector<1x10x32xf32> to vector<1x8x32xf32>
    %156 = tpu.concatenate %153, %154, %155 in 2 : vector<1x8x32xf32>, vector<1x8x32xf32>, vector<1x8x32xf32> -> vector<1x8x96xf32>
    %157 = vector.shape_cast %156 : vector<1x8x96xf32> to vector<8x96xf32>
    %c0_53 = arith.constant 0 : index
    %c0_54 = arith.constant 0 : index
    %158 = vector.load %arg6[%c0_53, %c0_54] : memref<96x32xf32, #tpu.memory_space<vmem>>, vector<96x32xf32>
    %cst_55 = arith.constant dense<0.000000e+00> : vector<8x32xf32>
    %159 = tpu.matmul %157, %158, %cst_55 {dimension_numbers = #tpu.dot_dimension_numbers<[1], [0], [0], [1], [0, 0, 1, 1], [], []>} : vector<8x96xf32>, vector<96x32xf32>, vector<8x32xf32> -> vector<8x32xf32>
    %c0_56 = arith.constant 0 : index
    %c0_57 = arith.constant 0 : index
    %160 = vector.load %arg7[%c0_56, %c0_57] : memref<1x32xf32, #tpu.memory_space<vmem>>, vector<1x32xf32>
    %161 = vector.broadcast %160 : vector<1x32xf32> to vector<8x32xf32>
    %162 = arith.addf %159, %161 : vector<8x32xf32>
    %163 = vector.shape_cast %162 : vector<8x32xf32> to vector<1x8x32xf32>
    %c0_58 = arith.constant 0 : index
    %c0_59 = arith.constant 0 : index
    %c0_60 = arith.constant 0 : index
    %164 = vector.load %arg9[%c0_58, %c0_59, %c0_60] : memref<1x8x32xf32, #tpu.memory_space<vmem>>, vector<1x8x32xf32>
    tpu.vector_store %arg9[%c0_58, %c0_59, %c0_60], %163 {strides = array<i32>} : memref<1x8x32xf32, #tpu.memory_space<vmem>>, vector<1x8x32xf32>,
    return
  }
  func.func @transform_0(%arg0: i32) -> (i32, i32, i32, i32) {
    %c0_i32 = arith.constant 0 : i32
    %c0_i32_0 = arith.constant 0 : i32
    %c0_i32_1 = arith.constant 0 : i32
    %c0_i32_2 = arith.constant 0 : i32
    return %arg0, %c0_i32, %c0_i32_0, %c0_i32_1 : i32, i32, i32, i32
  }
  func.func @transform_1(%arg0: i32) -> (i32, i32) {
    %c0_i32 = arith.constant 0 : i32
    %c0_i32_0 = arith.constant 0 : i32
    %c0_i32_1 = arith.constant 0 : i32
    return %c0_i32, %c0_i32_0 : i32, i32
  }
  func.func @transform_2(%arg0: i32) -> (i32, i32) {
    %c0_i32 = arith.constant 0 : i32
    %c0_i32_0 = arith.constant 0 : i32
    %c0_i32_1 = arith.constant 0 : i32
    return %c0_i32, %c0_i32_0 : i32, i32
  }
  func.func @transform_3(%arg0: i32) -> (i32, i32) {
    %c0_i32 = arith.constant 0 : i32
    %c0_i32_0 = arith.constant 0 : i32
    %c0_i32_1 = arith.constant 0 : i32
    return %c0_i32, %c0_i32_0 : i32, i32
  }
  func.func @transform_4(%arg0: i32) -> (i32, i32) {
    %c0_i32 = arith.constant 0 : i32
    %c0_i32_0 = arith.constant 0 : i32
    %c0_i32_1 = arith.constant 0 : i32
    return %c0_i32, %c0_i32_0 : i32, i32
  }
  func.func @transform_5(%arg0: i32) -> (i32, i32) {
    %c0_i32 = arith.constant 0 : i32
    %c0_i32_0 = arith.constant 0 : i32
    %c0_i32_1 = arith.constant 0 : i32
    return %c0_i32, %c0_i32_0 : i32, i32
  }
  func.func @transform_6(%arg0: i32) -> (i32, i32) {
    %c0_i32 = arith.constant 0 : i32
    %c0_i32_0 = arith.constant 0 : i32
    %c0_i32_1 = arith.constant 0 : i32
    return %c0_i32, %c0_i32_0 : i32, i32
  }
  func.func @transform_7(%arg0: i32) -> (i32, i32, i32) {
    %c0_i32 = arith.constant 0 : i32
    %c0_i32_0 = arith.constant 0 : i32
    %c0_i32_1 = arith.constant 0 : i32
    return %arg0, %c0_i32, %c0_i32_0 : i32, i32, i32
  }
  func.func @transform_8(%arg0: i32) -> (i32, i32, i32) {
    %c0_i32 = arith.constant 0 : i32
    %c0_i32_0 = arith.constant 0 : i32
    %c0_i32_1 = arith.constant 0 : i32
    return %arg0, %c0_i32, %c0_i32_0 : i32, i32, i32
  }
}

</mosaic_0001>

<bundles_post_ra>
// kernel: tpu_custom_call.1
= control target key start
LH: loop header
LB: loop body
LE: loop exit
PB: predicated region body
PF: predicated region fallthrough
CT: control target
= control target key end

     0   :  { %14 = vsyncpa [#allocation3], 0  ;;  %s4328_s0 = inlined_call_operand.vmem [shape: f32[2,16,16,4], index: 0, kind: input, shape index: {}]   ;;  %s4329_s1 = inlined_call_operand.vmem [shape: f32[36,16], index: 1, kind: input, shape index: {}]   ;;  %s4330_s2 = inlined_call_operand.vmem [shape: f32[1,16], index: 2, kind: input, shape index: {}]   ;;  %s4331_s3 = inlined_call_operand.vmem [shape: f32[48,32], index: 3, kind: input, shape index: {}]   ;;  %s4332_s4 = inlined_call_operand.vmem [shape: f32[1,32], index: 4, kind: input, shape index: {}]   ;;  %s4333_s5 = inlined_call_operand.vmem [shape: f32[96,32], index: 5, kind: input, shape index: {}]   ;;  %s4334_s6 = inlined_call_operand.vmem [shape: f32[1,32], index: 6, kind: input, shape index: {}]   ;;  %s4335_s7 = inlined_call_operand.vmem [shape: f32[2,7,32], index: 7, kind: output, shape index: {0}]   ;;  %s4336_s8 = inlined_call_operand.hbm [shape: f32[2,8,32], index: 8, kind: output, shape index: {1}]  }
   0x1   :  { %16 = vsyncpa [#allocation3 + $0x1], 0  ;;  %s3317_s27 = smov 0   ;;  %s3319_s28 = smov 0  }
   0x2   :  { %s3321_s29 = smov 0   ;;  %s3323_s30 = smov 0  }
   0x3 LB: > { %s3338_s9 = sadd.s32 4294967295, %s3256_s30   ;;  %s3004_s10 = sadd.s32 4294967294, %s3256_s30   ;;  %s3256_s30 = sphi %s3323_s30, %s4381_s30   ;;  %s3252_s29 = sphi %s3321_s29, %s4380_s29   ;;  %s3248_s28 = sphi %s3319_s28, %s4379_s28   ;;  %s3244_s27 = sphi %s3317_s27, %s4378_s27  }
   0x4   : > { %s3342_s11 = sadd.s32 1, %s3256_s30   ;;  %s207_s12 = sadd.s32 1, %s3252_s29 }
   0x5   : > { %s204_s13 = ssub.s32 %s3256_s30, %s3342_s11  ;;  %p217_p0 = scmp.ne.s32.totalorder %s3252_s29, %s3248_s28 }
   0x6   : > { %p205_p1 = scmp.eq.s32.totalorder %s204_s13, 0  ;;  %p218_p2 = scmp.eq.s32.totalorder %s3338_s9, 1 }
   0x7   : > { %p223_p3 = scmp.ne.s32.totalorder %s3248_s28, %s3244_s27  ;;  %p224_p4 = scmp.eq.s32.totalorder %s3004_s10, 1 }
   0x8   : > { %s3353_s14 = scalar_select %p205_p1, %s3252_s29, %s207_s12  }
   0x9   : > { %p3355_p5 = por %p218_p2, %p217_p0  ;;  %p3359_p6 = por %p224_p4, %p223_p3 }
   0xa   : > { %p3007_p7 = scmp.ge.s32.totalorder %s3256_s30, 1  ;;  %p268_p8 = scmp.lt.s32.totalorder %s3256_s30, 3 }
   0xc   : > { %p269_p9 = pnand %p3007_p7, %p268_p8 }
   0xe   : > { %272 = sbr.rel (%p269_p9) target bundleno = 1318 (0x526), region = 48 }
  0x15   : > { %p306_p10 = scmp.lt.s32.totalorder %s3338_s9, 1  ;;  %v503_v0 = vlaneseq  ;;  %v3258_v1 = vmov 1966171168   ;;  %vm347_vm0 = vcmask 31744   ;;  %vm406_vm1 = vcmask 29696   ;;  %s3259_s22 = smov 8  }
  0x16   : > { %v501_v2 = vunpack.c.l.s4 %v3258_v1  ;;  %vm493_vm2 = vcmask 1041408   ;;  %vm596_vm3 = vcmask 1042432   ;;  %vm434_vm4 = vcmask 1043456   ;;  %s3260_s23 = smov 4   ;;  %s3261_s24 = smov 12  }
  0x17   : > { %s3367_s17 = scalar_select %p306_p10, %s3338_s9, 1  ;;  %v504_v4 = vshrl.u32 %v503_v0, 7  ;;  %vm489_vm5 = vcmask 1040384   ;;  %vm2561_vm6 = vcmask 64512   ;;  %vm2564_vm7 = vcmask 97280  }
  0x18   : > { %v502_v3 = vunpack.c.0.s8 %v501_v2  ;;  %s3262_s25 = smov 16   ;;  %s3263_s26 = smov 20   ;;  %vm2567_vm8 = vcmask 130048   ;;  %vm2570_vm9 = vcmask 162816   ;;  %vm2573_vm10 = vcmask 195584  }
  0x19   : > { %s3024_s18 = sshll.u32 %s3367_s17, 8  ;;  %s3264_s10 = smov 24   ;;  %vm2576_vm11 = vcmask 228352   ;;  %vm2579_vm12 = vcmask 261120   ;;  %vm2596_vm13 = vcmask 293888   ;;  %vm3268_vm14 = vmmov 0  }
  0x1a   : > { %s3373_s21 = scalar_lea.vmem %s4328_s0, %s3024_s18  ;;  %v3415_v27 = vsub.s32 %v502_v3, %v504_v4  ;;  %s3265_s12 = smov 28   ;;  %vm2687_vm15 = vcmask 1045504  }
  0x1b   : > { %v331_v5 = vld [vmem:[%s3373_s21 + $0x80] sm:$0xff]  ;;  %v332_v6 = vld [vmem:[%s3373_s21 + $0x88] sm:$0xff]  ;;  %v333_v7 = vld [vmem:[%s3373_s21 + $0x90] sm:$0xff]  ;;  %s3266_s13 = smov 32   ;;  %s303_s19 = sand.u32 1, %s3248_s28  }
  0x1c   : > { %v334_v8 = vld [vmem:[%s3373_s21 + $0x98] sm:$0xff]  ;;  %v335_v9 = vld [vmem:[%s3373_s21 + $0xa0] sm:$0xff]  ;;  %v336_v10 = vld [vmem:[%s3373_s21 + $0xa8] sm:$0xff]  ;;  %v3382_v11 = vsel %vm347_vm0, %v331_v5, 0.0  ;;  %v3385_v12 = vsel %vm347_vm0, %v333_v7, 0.0  ;;  %v3388_v13 = vsel %vm347_vm0, %v332_v6, 0.0 }
  0x1d   : > { %v337_v14 = vld [vmem:[%s3373_s21 + $0xb0] sm:$0xff]  ;;  %v338_v15 = vld [vmem:[%s3373_s21 + $0xb8] sm:$0xff]  ;;  %v339_v16 = vld [vmem:[%s3373_s21 + $0xc0] sm:$0xff]  ;;  %v3394_v17 = vsel %vm347_vm0, %v334_v8, 0.0  ;;  %v388_v18 = vadd.f32 %v3385_v12, %v3382_v11  ;;  %v3399_v19 = vsel %vm347_vm0, %v335_v9, 0.0  ;;  %v3402_v20 = vsel %vm347_vm0, %v336_v10, 0.0 }
  0x1e   : > { %v340_v21 = vld [vmem:[%s3373_s21 + $0xc8] sm:$0xff]  ;;  %v341_v22 = vld [vmem:[%s3373_s21 + $0xd0] sm:$0xff]  ;;  %v342_v23 = vld [vmem:[%s3373_s21 + $0xd8] sm:$0xff]  ;;  %v3408_v24 = vsel %vm347_vm0, %v337_v14, 0.0  ;;  %v3411_v25 = vsel %vm347_vm0, %v339_v16, 0.0  ;;  %v397_v26 = vadd.f32 %v3394_v17, %v3388_v13  ;;  %v3422_v30 = vsel %vm347_vm0, %v338_v15, 0.0 }
  0x1f   : > { %v390_v28 = vadd.f32 %v3399_v19, %v388_v18  ;;  %v3419_v29 = vsel %vm347_vm0, %v341_v22, 0.0  ;;  %v3425_v31 = vsel %vm347_vm0, %v340_v21, 0.0  ;;  %v343_v32 = vld [vmem:[%s3373_s21 + $0xe0] sm:$0xff]  ;;  %v3431_v35 = vsel %vm347_vm0, %v342_v23, 0.0  ;;  %v344_v36 = vld [vmem:[%s3373_s21 + $0xe8] sm:$0xff]  ;;  %v317_v39 = vld [vmem:[%s3373_s21 + $0x10] sm:$0xff] }
  0x20   : > { %v315_v33 = vld [vmem:[%s3373_s21] sm:$0xff]  ;;  %v399_v34 = vadd.f32 %v3402_v20, %v397_v26  ;;  %4355 = vst [vmem:[#allocation5_spill] sm:$0xff] %v3431_v35  ;;  %v920_v37 = vadd.f32 %v3399_v19, %v3385_v12  ;;  %v926_v38 = vadd.f32 %v3402_v20, %v3394_v17  ;;  %v3441_v41 = vsel %vm347_vm0, %v343_v32, 0.0  ;;  %v321_v43 = vld [vmem:[%s3373_s21 + $0x30] sm:$0xff]  ;;  %v316_v49 = vld [vmem:[%s3373_s21 + $0x8] sm:$0xff]  ;;  %s3008_s20 = sshll.u32 %s303_s19, 3 }
  0x21   : > { %v392_v40 = vadd.f32 %v3408_v24, %v390_v28  ;;  %v319_v42 = vld [vmem:[%s3373_s21 + $0x20] sm:$0xff]  ;;  %v348_v44 = vsel %vm347_vm0, %v315_v33, 0.0  ;;  %v3447_v45 = vsel %vm347_vm0, %v317_v39, 0.0  ;;  %v318_v50 = vld [vmem:[%s3373_s21 + $0x18] sm:$0xff]  ;;  %v3458_v54 = vsel %vm347_vm0, %v344_v36, 0.0 }
  0x22   : > { %v401_v46 = vadd.f32 %v3422_v30, %v399_v34  ;;  %v921_v47 = vadd.f32 %v920_v37, %v3408_v24  ;;  %v927_v48 = vadd.f32 %v926_v38, %v3422_v30  ;;  %v323_v51 = vld [vmem:[%s3373_s21 + $0x40] sm:$0xff]  ;;  %v350_v52 = vadd.f32 %v3447_v45, %v348_v44  ;;  %4356 = vst [vmem:[#allocation6_spill] sm:$0xff] %v3458_v54 }
  0x23   : > { %v394_v53 = vadd.f32 %v3411_v25, %v392_v40  ;;  %v3461_v55 = vsel %vm347_vm0, %v319_v42, 0.0  ;;  %v3464_v56 = vsel %vm347_vm0, %v321_v43, 0.0  ;;  %v3474_v62 = vsel %vm347_vm0, %v323_v51, 0.0 }
  0x24   : > { %v403_v57 = vadd.f32 %v3425_v31, %v401_v46  ;;  %v922_v58 = vadd.f32 %v921_v47, %v3411_v25  ;;  %v928_v59 = vadd.f32 %v927_v48, %v3425_v31  ;;  %v352_v60 = vadd.f32 %v3461_v55, %v350_v52 }
  0x25   : > { %v3471_v61 = vadd.f32 %v3419_v29, %v394_v53  ;;  %v3477_v63 = vsel %vm347_vm0, %v316_v49, 0.0  ;;  %v3480_v0 = vsel %vm347_vm0, %v318_v50, 0.0 }
  0x26   : > { %v3483_v1 = vadd.f32 %v3431_v35, %v403_v57  ;;  %v923_v2 = vadd.f32 %v922_v58, %v3419_v29  ;;  %v929_v3 = vadd.f32 %v928_v59, %v3431_v35  ;;  %v3488_v4 = vadd.f32 %v3464_v56, %v352_v60 }
  0x27   : > { %4357 = vst [vmem:[#allocation7_spill] sm:$0xff] %v3471_v61  ;;  %v737_v5 = vrot.slane %v3471_v61, 2  ;;  %v768_v6 = vrot.slane %v3471_v61, 6  ;;  %v571_v7 = vrot.slane %v3471_v61, 1  ;;  %v603_v8 = vrot.slane %v3471_v61, 5 }
  0x28   : > { %4358 = vst [vmem:[#allocation8_spill] sm:$0xff] %v3483_v1  ;;  %v769_v9 = vrot.slane %v3483_v1, 6  ;;  %v797_v10 = vrot.slane %v3483_v1, 2  ;;  %v604_v14 = vrot.slane %v3483_v1, 5  ;;  %v632_v15 = vrot.slane %v3483_v1, 1 }
  0x29   : > { %v755_v16 = vsel %vm406_vm1, %v737_v5, 0.0  ;;  %v589_v18 = vsel %vm406_vm1, %v571_v7, 0.0  ;;  %v3501_v21 = vadd.f32 %v3441_v41, %v923_v2  ;;  %v3504_v22 = vadd.f32 %v3458_v54, %v929_v3 }
  0x2a   : > { %v756_v23 = vrot.slane %v755_v16, 4  ;;  %v770_v26 = vsel %vm493_vm2, %v768_v6, %v769_v9  ;;  %v815_v28 = vsel %vm406_vm1, %v797_v10, 0.0  ;;  %v590_v32 = vrot.slane %v589_v18, 4 }
  0x2b   : > { %v788_v33 = vsel %vm406_vm1, %v770_v26, 0.0  ;;  %v816_v34 = vrot.slane %v815_v28, 4  ;;  %v605_v36 = vsel %vm596_vm3, %v603_v8, %v604_v14  ;;  %v650_v37 = vsel %vm406_vm1, %v632_v15, 0.0 }
  0x2c   : > { %v757_v38 = vadd.f32 %v756_v23, %v755_v16  ;;  %v789_v39 = vrot.slane %v788_v33, 4  ;;  %v591_v40 = vadd.f32 %v590_v32, %v589_v18  ;;  %v623_v42 = vsel %vm406_vm1, %v605_v36, 0.0  ;;  %v325_v36 = vld [vmem:[%s3373_s21 + $0x50] sm:$0xff] }
  0x2d   : > { %v817_v43 = vadd.f32 %v816_v34, %v815_v28  ;;  %v624_v44 = vrot.slane %v623_v42, 4  ;;  %v651_v46 = vrot.slane %v650_v37, 4  ;;  %v946_v47 = vsel %vm406_vm1, %v3501_v21, 0.0 }
  0x2e   : > { %v758_v48 = vrot.slane %v757_v38, 2  ;;  %v790_v49 = vadd.f32 %v789_v39, %v788_v33  ;;  %v592_v50 = vrot.slane %v591_v40, 2  ;;  %v947_v51 = vrot.slane %v946_v47, 4 }
  0x2f   : > { %v818_v52 = vrot.slane %v817_v43, 2  ;;  %v625_v53 = vadd.f32 %v624_v44, %v623_v42  ;;  %v652_v57 = vadd.f32 %v651_v46, %v650_v37  ;;  %v965_v58 = vrot.slane %v3501_v21, 4 }
  0x30   : > { %v759_v59 = vadd.f32 %v758_v48, %v757_v38  ;;  %v791_v60 = vrot.slane %v790_v49, 2  ;;  %v593_v2 = vadd.f32 %v592_v50, %v591_v40  ;;  %v948_v3 = vadd.f32 %v947_v51, %v946_v47  ;;  %v320_v50 = vld [vmem:[%s3373_s21 + $0x28] sm:$0xff] }
  0x31   : > { %v819_v5 = vadd.f32 %v818_v52, %v817_v43  ;;  %v626_v6 = vrot.slane %v625_v53, 2  ;;  %v653_v7 = vrot.slane %v652_v57, 2  ;;  %v966_v8 = vrot.slane %v3504_v22, 4 }
  0x32   : > { %v760_v9 = vrot.slane %v759_v59, 1  ;;  %v792_v10 = vadd.f32 %v791_v60, %v790_v49  ;;  %v594_v14 = vrot.slane %v593_v2, 1  ;;  %v949_v15 = vrot.slane %v948_v3, 2 }
  0x33   : > { %v820_v16 = vrot.slane %v819_v5, 1  ;;  %v627_v18 = vadd.f32 %v626_v6, %v625_v53  ;;  %v654_v23 = vadd.f32 %v653_v7, %v652_v57  ;;  %v967_v26 = vsel %vm434_vm4, %v965_v58, %v966_v8  ;;  %v322_v57 = vld [vmem:[%s3373_s21 + $0x38] sm:$0xff] }
  0x34   : > { %v761_v28 = vadd.f32 %v760_v9, %v759_v59  ;;  %v793_v32 = vrot.slane %v792_v10, 1  ;;  %v595_v33 = vadd.f32 %v594_v14, %v593_v2  ;;  %v950_v34 = vadd.f32 %v949_v15, %v948_v3  ;;  %v324_v14 = vld [vmem:[%s3373_s21 + $0x48] sm:$0xff] }
  0x35   : > { %v821_v37 = vadd.f32 %v820_v16, %v819_v5  ;;  %v628_v38 = vrot.slane %v627_v18, 1  ;;  %v655_v39 = vrot.slane %v654_v23, 1  ;;  %v985_v40 = vsel %vm406_vm1, %v967_v26, 0.0  ;;  %v326_v26 = vld [vmem:[%s3373_s21 + $0x58] sm:$0xff] }
  0x36   : > { %v794_v42 = vadd.f32 %v793_v32, %v792_v10  ;;  %v951_v43 = vrot.slane %v950_v34, 1  ;;  %v986_v44 = vrot.slane %v985_v40, 4  ;;  %v1006_v46 = vsel %vm406_vm1, %v3504_v22, 0.0 }
  0x37   : > { %v629_v47 = vadd.f32 %v628_v38, %v627_v18  ;;  %v656_v48 = vadd.f32 %v655_v39, %v654_v23  ;;  %v1007_v49 = vrot.slane %v1006_v46, 4  ;;  %v3523_v51 = vsel %vm347_vm0, %v325_v36, 0.0 }
  0x38   : > { %v824_v52 = vsel %vm489_vm5, %v761_v28, %v794_v42  ;;  %v987_v53 = vadd.f32 %v986_v44, %v985_v40  ;;  %v356_v58 = vadd.f32 %v3474_v62, %v3488_v4  ;;  %v361_v59 = vadd.f32 %v3480_v0, %v3477_v63  ;;  %v327_v44 = vld [vmem:[%s3373_s21 + $0x60] sm:$0xff] }
  0x39   : > { %v827_v60 = vsel %vm493_vm2, %v824_v52, %v821_v37  ;;  %v659_v2 = vsel %vm489_vm5, %v595_v33, %v629_v47  ;;  %v952_v3 = vadd.f32 %v951_v43, %v950_v34  ;;  %v1008_v5 = vadd.f32 %v1007_v49, %v1006_v46  ;;  %v329_v46 = vld [vmem:[%s3373_s21 + $0x70] sm:$0xff] }
  0x3a   : > { %v883_v6 = vrot.slane %v827_v60, %v3415_v27  ;;  %v662_v7 = vsel %vm493_vm2, %v659_v2, %v656_v48  ;;  %v988_v8 = vrot.slane %v987_v53, 2  ;;  %v3536_v9 = vsel %vm347_vm0, %v320_v50, 0.0  ;;  %v328_v60 = vld [vmem:[%s3373_s21 + $0x68] sm:$0xff]  ;;  %v330_v2 = vld [vmem:[%s3373_s21 + $0x78] sm:$0xff] }
  0x3b   : > { %v718_v4 = vrot.slane %v662_v7, %v3415_v27  ;;  %v1009_v10 = vrot.slane %v1008_v5, 2  ;;  %v363_v63 = vadd.f32 %v3536_v9, %v361_v59  ;;  %v3542_v15 = vsel %vm347_vm0, %v322_v57, 0.0 }
  0x3c   : > { %v3545_v16 = vrot.slane %v883_v6, %v3415_v27  ;;  %v884_v18 = vcombine.high %v883_v6, %v883_v6  ;;  %v989_v23 = vadd.f32 %v988_v8, %v987_v53  ;;  %v3549_v28 = vadd.f32 %v3523_v51, %v356_v58 }
  0x3d   : > { %v3552_v32 = vrot.slane %v718_v4, %v3415_v27  ;;  %v719_v33 = vcombine.high %v718_v4, %v718_v4  ;;  %v1010_v34 = vadd.f32 %v1009_v10, %v1008_v5  ;;  %v365_v36 = vadd.f32 %v3542_v15, %v363_v63 }
  0x3e   : > { %4359 = vst [vmem:[#allocation9_spill] sm:$0xff] %v3545_v16  ;;  %4360 = vst [vmem:[#allocation10_spill] sm:$0xff] %v3549_v28  ;;  %v899_v37 = vcombine.high %v3545_v16, %v3545_v16  ;;  %v3558_v38 = vrot.slane %v884_v18, %v3415_v27  ;;  %v990_v39 = vrot.slane %v989_v23, 1  ;;  %v3561_v40 = vsel %vm347_vm0, %v324_v14, 0.0 }
  0x3f   : > { %v734_v42 = vcombine.high %v3552_v32, %v3552_v32  ;;  %v1011_v43 = vrot.slane %v1010_v34, 1  ;;  %v367_v47 = vadd.f32 %v3561_v40, %v365_v36  ;;  %v3569_v48 = vsel %vm347_vm0, %v326_v26, 0.0 }
  0x40   : > { %4361 = vst [vmem:[#allocation11_spill] sm:$0xff] %v3558_v38  ;;  %v2131_v49 = vrot.slane %v899_v37, %v3415_v27  ;;  %v991_v52 = vadd.f32 %v990_v39, %v989_v23  ;;  %v370_v53 = vadd.f32 %v3523_v51, %v3474_v62  ;;  %v3578_v58 = vrot.slane %v719_v33, %v3415_v27 }
  0x41   : > { %v2062_v57 = vrot.slane %v734_v42, %v3415_v27  ;;  %v1012_v59 = vadd.f32 %v1011_v43, %v1010_v34  ;;  %v3583_v5 = vadd.f32 %v3569_v48, %v367_v47  ;;  %v3588_v8 = vsel %vm347_vm0, %v327_v44, 0.0 }
  0x42   : > { %v2138_v6 = vrot.slane %v2131_v49, %v3415_v27  ;;  %v1015_v7 = vsel %vm489_vm5, %v952_v3, %v991_v52  ;;  %v3591_v4 = vsel %vm347_vm0, %v329_v46, 0.0  ;;  %v372_v63 = vadd.f32 %v3588_v8, %v370_v53 }
  0x43   : > { %4362 = vst [vmem:[#allocation12_spill] sm:$0xff] %v3583_v5  ;;  %v2069_v10 = vrot.slane %v2062_v57, %v3415_v27  ;;  %v1018_v14 = vsel %vm493_vm2, %v1015_v7, %v1012_v59  ;;  %v379_v18 = vadd.f32 %v3569_v48, %v3561_v40  ;;  %v3603_v23 = vsel %vm347_vm0, %v328_v60, 0.0 }
  0x44   : > { %2141 = vrot.lane.b32.xlu1 %v2138_v6, %s3259_s22  ;;  %v3600_v3 = vrot.slane %v1018_v14, %v3415_v27  ;;  %v3606_v26 = vsel %vm347_vm0, %v330_v2, 0.0  ;;  %v569_v33 = vrot.slane %v3549_v28, 1  ;;  %v374_v34 = vadd.f32 %v3591_v4, %v372_v63 }
  0x45   : > { %2072 = vrot.lane.b32.xlu0 %v2069_v10, %s3260_s23  ;;  %v381_v36 = vadd.f32 %v3603_v23, %v379_v18  ;;  %v597_v37 = vrot.slane %v3549_v28, 5  ;;  %v598_v39 = vrot.slane %v3583_v5, 5  ;;  %v630_v46 = vrot.slane %v3583_v5, 1 }
  0x46   : > { %v3618_v43 = vrot.slane %v3600_v3, %v3415_v27  ;;  %v575_v44 = vsel %vm406_vm1, %v569_v33, 0.0  ;;  %v376_v47 = vadd.f32 %v3382_v11, %v374_v34  ;;  %v1093_v33 = vrot.slane %v3501_v21, 1 }
  0x47   : > { %v383_v49 = vadd.f32 %v3606_v26, %v381_v36  ;;  %v576_v52 = vrot.slane %v575_v44, 4  ;;  %v599_v53 = vsel %vm596_vm3, %v597_v37, %v598_v39  ;;  %v636_v2 = vsel %vm406_vm1, %v630_v46, 0.0 }
  0x48   : > { %v1090_v59 = vcombine.high %v3618_v43, %v3618_v43  ;;  %v609_v60 = vsel %vm406_vm1, %v599_v53, 0.0  ;;  %v3632_v6 = vadd.f32 %v3385_v12, %v376_v47  ;;  %v637_v18 = vrot.slane %v636_v2, 4 }
  0x49   : > { %v385_v7 = vadd.f32 %v3388_v13, %v383_v49  ;;  %v577_v10 = vadd.f32 %v576_v52, %v575_v44  ;;  %v610_v14 = vrot.slane %v609_v60, 4  ;;  %v1124_v34 = vrot.slane %v3501_v21, 5 }
  0x4a   : > { %4363 = vst [vmem:[#allocation13_spill] sm:$0xff] %v3632_v6  ;;  %v2200_v63 = vrot.slane %v1090_v59, %v3415_v27  ;;  %v570_v37 = vrot.slane %v3632_v6, 1  ;;  %v600_v46 = vrot.slane %v3632_v6, 5  ;;  %v638_v44 = vadd.f32 %v637_v18, %v636_v2 }
  0x4b   : > { %v3639_v36 = vadd.f32 %v3394_v17, %v385_v7  ;;  %v578_v39 = vrot.slane %v577_v10, 2  ;;  %v611_v49 = vadd.f32 %v610_v14, %v609_v60  ;;  %v1111_v52 = vsel %vm406_vm1, %v1093_v33, 0.0 }
  0x4c   : > { %v2207_v47 = vrot.slane %v2200_v63, %v3415_v27  ;;  %v582_v59 = vsel %vm406_vm1, %v570_v37, 0.0  ;;  %v639_v61 = vrot.slane %v638_v44, 2  ;;  %v1112_v1 = vrot.slane %v1111_v52, 4 }
  0x4d   : > { %4364 = vst [vmem:[#allocation14_spill] sm:$0xff] %v3639_v36  ;;  %v579_v53 = vadd.f32 %v578_v39, %v577_v10  ;;  %v601_v50 = vrot.slane %v3639_v36, 5  ;;  %v631_v57 = vrot.slane %v3639_v36, 1  ;;  %v583_v7 = vrot.slane %v582_v59, 4 }
  0x4e   : > { %2210 = vrot.lane.b32.xlu1 %v2207_v47, %s3261_s24  ;;  %v612_v42 = vrot.slane %v611_v49, 2  ;;  %v1125_v10 = vrot.slane %v3504_v22, 5  ;;  %v640_v33 = vadd.f32 %v639_v61, %v638_v44  ;;  %v1113_v47 = vadd.f32 %v1112_v1, %v1111_v52 }
  0x4f   : > { %v580_v38 = vrot.slane %v579_v53, 1  ;;  %v602_v60 = vsel %vm596_vm3, %v600_v46, %v601_v50  ;;  %v643_v2 = vsel %vm406_vm1, %v631_v57, 0.0  ;;  %v584_v14 = vadd.f32 %v583_v7, %v582_v59 }
  0x50   : > { %v613_v63 = vadd.f32 %v612_v42, %v611_v49  ;;  %v616_v18 = vsel %vm406_vm1, %v602_v60, 0.0  ;;  %v644_v16 = vrot.slane %v643_v2, 4  ;;  %v641_v6 = vrot.slane %v640_v33, 1 }
  0x51   : > { %v581_v37 = vadd.f32 %v580_v38, %v579_v53  ;;  %v617_v39 = vrot.slane %v616_v18, 4  ;;  %v585_v36 = vrot.slane %v584_v14, 2  ;;  %v1126_v28 = vsel %vm596_vm3, %v1124_v34, %v1125_v10 }
  0x52   : > { %v614_v5 = vrot.slane %v613_v63, 1  ;;  %v645_v50 = vadd.f32 %v644_v16, %v643_v2  ;;  %v1114_v46 = vrot.slane %v1113_v47, 2  ;;  %v1144_v57 = vsel %vm406_vm1, %v1126_v28, 0.0 }
  0x53   : > { %v618_v54 = vadd.f32 %v617_v39, %v616_v18  ;;  %v586_v35 = vadd.f32 %v585_v36, %v584_v14  ;;  %v642_v42 = vadd.f32 %v641_v6, %v640_v33  ;;  %v1145_v49 = vrot.slane %v1144_v57, 4 }
  0x54   : > { %v615_v59 = vadd.f32 %v614_v5, %v613_v63  ;;  %v646_v61 = vrot.slane %v645_v50, 2  ;;  %v1115_v38 = vadd.f32 %v1114_v46, %v1113_v47  ;;  %v1153_v44 = vrot.slane %v3504_v22, 1 }
  0x55   : > { %v619_v7 = vrot.slane %v618_v54, 2  ;;  %v587_v1 = vrot.slane %v586_v35, 1  ;;  %v1146_v53 = vadd.f32 %v1145_v49, %v1144_v57  ;;  %v900_v34 = vadd.f32 %v3461_v55, %v3447_v45 }
  0x56   : > { %v657_v52 = vsel %vm489_vm5, %v581_v37, %v615_v59  ;;  %v647_v60 = vadd.f32 %v646_v61, %v645_v50  ;;  %v1116_v36 = vrot.slane %v1115_v38, 1  ;;  %v1171_v10 = vsel %vm406_vm1, %v1153_v44, 0.0 }
  0x57   : > { %v620_v16 = vadd.f32 %v619_v7, %v618_v54  ;;  %v660_v28 = vsel %vm493_vm2, %v657_v52, %v642_v42  ;;  %v588_v5 = vadd.f32 %v587_v1, %v586_v35  ;;  %v1147_v2 = vrot.slane %v1146_v53, 2 }
  0x58   : > { %v672_v6 = vrot.slane %v660_v28, %v3415_v27  ;;  %v648_v63 = vrot.slane %v647_v60, 1  ;;  %v1117_v18 = vadd.f32 %v1116_v36, %v1115_v38  ;;  %v1172_v33 = vrot.slane %v1171_v10, 4 }
  0x59   : > { %v621_v14 = vrot.slane %v620_v16, 1  ;;  %v1148_v47 = vadd.f32 %v1147_v2, %v1146_v53  ;;  %v901_v45 = vadd.f32 %v900_v34, %v3464_v56  ;;  %v905_v35 = vadd.f32 %v3536_v9, %v3480_v0 }
  0x5a   : > { %v673_v37 = vcombine.high %v672_v6, %v672_v6  ;;  %v680_v39 = vrot.slane %v672_v6, %v3415_v27  ;;  %v649_v50 = vadd.f32 %v648_v63, %v647_v60  ;;  %v1173_v46 = vadd.f32 %v1172_v33, %v1171_v10 }
  0x5b   : > { %v622_v54 = vadd.f32 %v621_v14, %v620_v16  ;;  %v1149_v42 = vrot.slane %v1148_v47, 1  ;;  %v902_v49 = vadd.f32 %v901_v45, %v3474_v62  ;;  %v906_v38 = vadd.f32 %v905_v35, %v3542_v15 }
  0x5c   : > { %v687_v57 = vrot.slane %v673_v37, %v3415_v27  ;;  %v688_v59 = vcombine.high %v680_v39, %v680_v39  ;;  %v1174_v61 = vrot.slane %v1173_v46, 2  ;;  %v910_v44 = vadd.f32 %v3588_v8, %v3523_v51 }
  0x5d   : > { %v658_v7 = vsel %vm489_vm5, %v588_v5, %v622_v54  ;;  %v1150_v53 = vadd.f32 %v1149_v42, %v1148_v47  ;;  %v903_v0 = vadd.f32 %v902_v49, %v3523_v51  ;;  %v907_v60 = vadd.f32 %v906_v38, %v3561_v40 }
  0x5e   : > { %v661_v1 = vsel %vm493_vm2, %v658_v7, %v649_v50  ;;  %v2007_v52 = vcombine.low %v680_v39, %v687_v57  ;;  %v1175_v16 = vadd.f32 %v1174_v61, %v1173_v46  ;;  %v911_v28 = vadd.f32 %v910_v44, %v3591_v4 }
  0x5f   : > { %v695_v34 = vrot.slane %v661_v1, %v3415_v27  ;;  %v4365_v5 = vcombine.low %v3552_v32, %v3578_v58  ;;  %v3683_v2 = vadd.f32 %v903_v0, %v3588_v8  ;;  %v915_v10 = vadd.f32 %v3603_v23, %v3569_v48 }
  0x60   : > { %v2017_v36 = vrot.slane %v2007_v52, %v3415_v27  ;;  %v1176_v33 = vrot.slane %v1175_v16, 1  ;;  %v908_v37 = vadd.f32 %v907_v60, %v3569_v48  ;;  %v1180_v39 = vsel %vm489_vm5, %v1117_v18, %v1150_v53 }
  0x61   : > { %v2038_v6 = vrot.slane %v4365_v5, %v3415_v27  ;;  %v696_v14 = vcombine.high %v695_v34, %v695_v34  ;;  %v703_v63 = vrot.slane %v695_v34, %v3415_v27  ;;  %v912_v47 = vadd.f32 %v911_v28, %v3382_v11 }
  0x62   : > { %v916_v45 = vadd.f32 %v915_v10, %v3606_v26  ;;  %v932_v32 = vsel %vm406_vm1, %v3683_v2, 0.0  ;;  %v1177_v46 = vadd.f32 %v1176_v33, %v1175_v16  ;;  %v3696_v35 = vadd.f32 %v908_v37, %v3603_v23 }
  0x63   : > { %v710_v58 = vrot.slane %v696_v14, %v3415_v27  ;;  %v711_v54 = vcombine.high %v703_v63, %v703_v63  ;;  %v2008_v50 = vcombine.low %v688_v59, %v703_v63  ;;  %v913_v57 = vadd.f32 %v912_v47, %v3385_v12 }
  0x64   : > { %v917_v42 = vadd.f32 %v916_v45, %v3388_v13  ;;  %v933_v18 = vrot.slane %v932_v32, 4  ;;  %v1183_v61 = vsel %vm493_vm2, %v1180_v39, %v1177_v46  ;;  %v959_v38 = vrot.slane %v3683_v2, 4 }
  0x65   : > { %v2009_v49 = vcombine.low %v710_v58, %v711_v54  ;;  %v2024_v7 = vrot.slane %v2008_v50, %v3415_v27  ;;  %v3704_v44 = vrot.slane %v1183_v61, %v3415_v27  ;;  %v3707_v59 = vadd.f32 %v913_v57, %v3399_v19 }
  0x66   : > { %v918_v1 = vadd.f32 %v917_v42, %v3394_v17  ;;  %v934_v52 = vadd.f32 %v933_v18, %v932_v32  ;;  %v960_v34 = vrot.slane %v3696_v35, 4  ;;  %v4366_v16 = vcombine.high %v3600_v3, %v3600_v3 }
  0x67   : > { %v2031_v53 = vrot.slane %v2009_v49, %v3415_v27  ;;  %v2039_v0 = vcombine.low %v2017_v36, %v2024_v7  ;;  %v3718_v28 = vrot.slane %v3704_v44, %v3415_v27  ;;  %v992_v14 = vsel %vm406_vm1, %v3696_v35, 0.0 }
  0x68   : > { %v1089_v60 = vrot.slane %v4366_v16, %v3415_v27  ;;  %v3721_v5 = vadd.f32 %v918_v1, %v3402_v20  ;;  %v935_v10 = vrot.slane %v934_v52, 2  ;;  %v939_v33 = vsel %vm406_vm1, %v3707_v59, 0.0 }
  0x69   : > { %v2040_v63 = vcombine.low %v2031_v53, %v2038_v6  ;;  %v2047_v36 = vrot.slane %v2039_v0, %v3415_v27  ;;  %v961_v3 = vsel %vm434_vm4, %v959_v38, %v960_v34  ;;  %v1255_v37 = vcombine.high %v3718_v28, %v3718_v28 }
  0x6a   : > { %v936_v39 = vadd.f32 %v935_v10, %v934_v52  ;;  %v940_v47 = vrot.slane %v939_v33, 4  ;;  %v962_v45 = vrot.slane %v3707_v59, 4  ;;  %v963_v58 = vrot.slane %v3721_v5, 4 }
  0x6b   : > { %v2054_v32 = vrot.slane %v2040_v63, %v3415_v27  ;;  %v971_v6 = vsel %vm406_vm1, %v961_v3, 0.0  ;;  %v993_v54 = vrot.slane %v992_v14, 4  ;;  %v2269_v50 = vrot.slane %v1255_v37, %v3415_v27 }
  0x6c   : > { %v937_v46 = vrot.slane %v936_v39, 1  ;;  %v941_v57 = vadd.f32 %v940_v47, %v939_v33  ;;  %v972_v42 = vrot.slane %v971_v6, 4  ;;  %v964_v49 = vsel %vm434_vm4, %v962_v45, %v963_v58 }
  0x6d   : > { %v2055_v18 = vcombine.low %v2047_v36, %v2054_v32  ;;  %v994_v7 = vadd.f32 %v993_v54, %v992_v14  ;;  %v999_v61 = vsel %vm406_vm1, %v3721_v5, 0.0  ;;  %v2276_v38 = vrot.slane %v2269_v50, %v3415_v27 }
  0x6e   : > { %v938_v1 = vadd.f32 %v937_v46, %v936_v39  ;;  %v942_v52 = vrot.slane %v941_v57, 2  ;;  %v973_v53 = vadd.f32 %v972_v42, %v971_v6  ;;  %v978_v0 = vsel %vm406_vm1, %v964_v49, 0.0 }
  0x6f   : > { %2070 = vrot.lane.b32.xlu0 %v2055_v18, %s3260_s23  ;;  %v995_v34 = vrot.slane %v994_v7, 2  ;;  %v1000_v16 = vrot.slane %v999_v61, 4  ;;  %v2148_v10 = vcombine.low %v3618_v43, %v1089_v60  ;;  %2279 = vrot.lane.b32.xlu1 %v2276_v38, %s3262_s25  ;;  %v979_v36 = vrot.slane %v978_v0, 4  ;;  %s3021_s23 = sshll.u32 %s3338_s9, 7  ;;  %s3271_s9 = smov [#allocation2]  }
  0x70   : > { %v943_v14 = vadd.f32 %v942_v52, %v941_v57  ;;  %v974_v63 = vrot.slane %v973_v53, 2  ;;  %v1258_v33 = vrot.slane %v3501_v21, 2  ;;  %v1289_v47 = vrot.slane %v3501_v21, 6 }
  0x71   : > { %v996_v3 = vadd.f32 %v995_v34, %v994_v7  ;;  %v1001_v37 = vadd.f32 %v1000_v16, %v999_v61  ;;  %v3746_v39 = vrot.slane %v2148_v10, %v3415_v27  ;;  %v980_v58 = vadd.f32 %v979_v36, %v978_v0 }
  0x72   : > { %v944_v45 = vrot.slane %v943_v14, 1  ;;  %v975_v32 = vadd.f32 %v974_v63, %v973_v53  ;;  %v1276_v43 = vsel %vm406_vm1, %v1258_v33, 0.0  ;;  %v1290_v50 = vrot.slane %v3504_v22, 6 }
  0x73   : > { %v997_v60 = vrot.slane %v996_v3, 1  ;;  %v1002_v6 = vrot.slane %v1001_v37, 2  ;;  %v1277_v54 = vrot.slane %v1276_v43, 4  ;;  %v981_v42 = vrot.slane %v980_v58, 2 }
  0x74   : > { %v945_v46 = vadd.f32 %v944_v45, %v943_v14  ;;  %v976_v57 = vrot.slane %v975_v32, 1  ;;  %v1318_v18 = vrot.slane %v3504_v22, 2  ;;  %v1291_v21 = vsel %vm493_vm2, %v1289_v47, %v1290_v50 }
  0x75   : > { %v998_v49 = vadd.f32 %v997_v60, %v996_v3  ;;  %v1003_v7 = vadd.f32 %v1002_v6, %v1001_v37  ;;  %v1278_v61 = vadd.f32 %v1277_v54, %v1276_v43  ;;  %v982_v52 = vadd.f32 %v981_v42, %v980_v58 }
  0x76   : > { %v977_v38 = vadd.f32 %v976_v57, %v975_v32  ;;  %v1309_v53 = vsel %vm406_vm1, %v1291_v21, 0.0  ;;  %v1336_v0 = vsel %vm406_vm1, %v1318_v18, 0.0  ;;  %v1091_v22 = vrot.slane %v3683_v2, 1 }
  0x77   : > { %v1004_v34 = vrot.slane %v1003_v7, 1  ;;  %v1279_v16 = vrot.slane %v1278_v61, 2  ;;  %v1310_v10 = vrot.slane %v1309_v53, 4  ;;  %v1337_v63 = vrot.slane %v1336_v0, 4 }
  0x78   : > { %v983_v14 = vrot.slane %v982_v52, 1  ;;  %v1013_v36 = vsel %vm489_vm5, %v938_v1, %v977_v38  ;;  %v1092_v33 = vrot.slane %v3707_v59, 1  ;;  %v1097_v60 = vsel %vm406_vm1, %v1091_v22, 0.0 }
  0x79   : > { %v1005_v3 = vadd.f32 %v1004_v34, %v1003_v7  ;;  %v1016_v37 = vsel %vm493_vm2, %v1013_v36, %v998_v49  ;;  %v1280_v47 = vadd.f32 %v1279_v16, %v1278_v61  ;;  %v1311_v45 = vadd.f32 %v1310_v10, %v1309_v53 }
  0x7a   : > { %v984_v32 = vadd.f32 %v983_v14, %v982_v52  ;;  %v1028_v58 = vrot.slane %v1016_v37, %v3415_v27  ;;  %v1338_v43 = vadd.f32 %v1337_v63, %v1336_v0  ;;  %v1098_v50 = vrot.slane %v1097_v60, 4 }
  0x7b   : > { %v1281_v6 = vrot.slane %v1280_v47, 1  ;;  %v1312_v54 = vrot.slane %v1311_v45, 2  ;;  %v1104_v1 = vsel %vm406_vm1, %v1092_v33, 0.0 }
  0x7c   : > { %v1014_v57 = vsel %vm489_vm5, %v945_v46, %v984_v32  ;;  %v1029_v42 = vcombine.high %v1028_v58, %v1028_v58  ;;  %v1036_v18 = vrot.slane %v1028_v58, %v3415_v27  ;;  %v1339_v7 = vrot.slane %v1338_v43, 2 }
  0x7d   : > { %v1017_v49 = vsel %vm493_vm2, %v1014_v57, %v1005_v3  ;;  %v1282_v61 = vadd.f32 %v1281_v6, %v1280_v47  ;;  %v1313_v21 = vadd.f32 %v1312_v54, %v1311_v45  ;;  %v1099_v38 = vadd.f32 %v1098_v50, %v1097_v60 }
  0x7e   : > { %v1043_v52 = vrot.slane %v1029_v42, %v3415_v27  ;;  %v1044_v53 = vcombine.high %v1036_v18, %v1036_v18  ;;  %v1051_v0 = vrot.slane %v1017_v49, %v3415_v27  ;;  %v1340_v34 = vadd.f32 %v1339_v7, %v1338_v43 }
  0x7f   : > { %v1314_v16 = vrot.slane %v1313_v21, 1  ;;  %v1100_v10 = vrot.slane %v1099_v38, 2  ;;  %v1105_v63 = vrot.slane %v1104_v1, 4  ;;  %v1118_v46 = vrot.slane %v3683_v2, 5 }
  0x80   : > { %v1052_v14 = vcombine.high %v1051_v0, %v1051_v0  ;;  %v1059_v36 = vrot.slane %v1051_v0, %v3415_v27  ;;  %v2145_v22 = vcombine.low %v1036_v18, %v1043_v52  ;;  %v1341_v33 = vrot.slane %v1340_v34, 1 }
  0x81   : > { %v1315_v3 = vadd.f32 %v1314_v16, %v1313_v21  ;;  %v1101_v37 = vadd.f32 %v1100_v10, %v1099_v38  ;;  %v1106_v47 = vadd.f32 %v1105_v63, %v1104_v1  ;;  %v1119_v45 = vrot.slane %v3696_v35, 5 }
  0x82   : > { %v1066_v32 = vrot.slane %v1052_v14, %v3415_v27  ;;  %v1067_v58 = vcombine.high %v1059_v36, %v1059_v36  ;;  %v2146_v60 = vcombine.low %v1044_v53, %v1059_v36  ;;  %v2155_v43 = vrot.slane %v2145_v22, %v3415_v27 }
  0x83   : > { %v1342_v6 = vadd.f32 %v1341_v33, %v1340_v34  ;;  %v1345_v54 = vsel %vm489_vm5, %v1282_v61, %v1315_v3  ;;  %v1102_v50 = vrot.slane %v1101_v37, 1  ;;  %v1107_v57 = vrot.slane %v1106_v47, 2 }
  0x84   : > { %v2147_v42 = vcombine.low %v1066_v32, %v1067_v58  ;;  %v2162_v18 = vrot.slane %v2146_v60, %v3415_v27  ;;  %v1120_v7 = vsel %vm596_vm3, %v1118_v46, %v1119_v45  ;;  %v1121_v1 = vrot.slane %v3707_v59, 5 }
  0x85   : > { %v1240_v49 = vcombine.high %v3704_v44, %v3704_v44  ;;  %v1348_v21 = vsel %vm493_vm2, %v1345_v54, %v1342_v6  ;;  %v1108_v38 = vadd.f32 %v1107_v57, %v1106_v47  ;;  %v1122_v52 = vrot.slane %v3721_v5, 5 }
  0x86   : > { %v2169_v53 = vrot.slane %v2147_v42, %v3415_v27  ;;  %v2177_v61 = vcombine.low %v2155_v43, %v2162_v18  ;;  %v3782_v0 = vrot.slane %v1348_v21, %v3415_v27  ;;  %v1130_v34 = vsel %vm406_vm1, %v1120_v7, 0.0 }
  0x87   : > { %v1109_v16 = vrot.slane %v1108_v38, 1  ;;  %v1123_v10 = vsel %vm596_vm3, %v1121_v1, %v1122_v52  ;;  %v1131_v63 = vrot.slane %v1130_v34, 4  ;;  %v1151_v46 = vrot.slane %v3696_v35, 1  ;;  %v346_v52 = vld [vmem:[%s3373_s21 + $0xf8] sm:$0xff] }
  0x88   : > { %v2178_v44 = vcombine.low %v2169_v53, %v3746_v39  ;;  %v2185_v14 = vrot.slane %v2177_v61, %v3415_v27  ;;  %v3791_v36 = vrot.slane %v3782_v0, %v3415_v27  ;;  %v1103_v22 = vadd.f32 %v1102_v50, %v1101_v37  ;;  %v345_v50 = vld [vmem:[%s3373_s21 + $0xf0] sm:$0xff] }
  0x89   : > { %v1110_v33 = vadd.f32 %v1109_v16, %v1108_v38  ;;  %v1132_v3 = vadd.f32 %v1131_v63, %v1130_v34  ;;  %v1137_v47 = vsel %vm406_vm1, %v1123_v10, 0.0  ;;  %v1152_v45 = vrot.slane %v3721_v5, 1 }
  0x8a   : > { %v2192_v32 = vrot.slane %v2178_v44, %v3415_v27  ;;  %v1420_v39 = vcombine.high %v3791_v36, %v3791_v36  ;;  %v1138_v58 = vrot.slane %v1137_v47, 4  ;;  %v1157_v60 = vsel %vm406_vm1, %v1151_v46, 0.0 }
  0x8b   : > { %v1133_v43 = vrot.slane %v1132_v3, 2  ;;  %v1158_v6 = vrot.slane %v1157_v60, 4  ;;  %v1164_v54 = vsel %vm406_vm1, %v1152_v45, 0.0  ;;  %v1254_v37 = vrot.slane %v1240_v49, %v3415_v27 }
  0x8c   : > { %v2193_v57 = vcombine.low %v2185_v14, %v2192_v32  ;;  %v2338_v42 = vrot.slane %v1420_v39, %v3415_v27  ;;  %v1139_v18 = vadd.f32 %v1138_v58, %v1137_v47  ;;  %v1165_v7 = vrot.slane %v1164_v54, 4 }
  0x8d   : > { %v1134_v1 = vadd.f32 %v1133_v43, %v1132_v3  ;;  %v1159_v21 = vadd.f32 %v1158_v6, %v1157_v60  ;;  %v2217_v38 = vcombine.low %v3718_v28, %v1254_v37  ;;  %v1441_v53 = vadd.f32 %v3408_v24, %v3399_v19 }
  0x8e   : > { %2208 = vrot.lane.b32.xlu0 %v2193_v57, %s3261_s24  ;;  %v2345_v61 = vrot.slane %v2338_v42, %v3415_v27  ;;  %v1140_v34 = vrot.slane %v1139_v18, 2  ;;  %v1166_v49 = vadd.f32 %v1165_v7, %v1164_v54  ;;  %v1445_v16 = vsel %vm347_vm0, %v345_v50, 0.0  ;;  %v4367_v7 = vld [vmem:[#allocation5_spill] sm:$0xff]  ;;  %s3011_s24 = sshll.u32 %s3367_s17, 3  ;;  %s3270_s17 = smov 64  }
  0x8f   : > { %v1135_v10 = vrot.slane %v1134_v1, 1  ;;  %v1160_v63 = vrot.slane %v1159_v21, 2  ;;  %v3811_v46 = vrot.slane %v2217_v38, %v3415_v27  ;;  %v1442_v44 = vadd.f32 %v1441_v53, %v3411_v25  ;;  %s314_s18 = scalar_lea.vmem %s4335_s7, %s3011_s24  ;;  %s305_s24 = scalar_lea.vmem [#allocation2], %s3008_s20 }
  0x90   : > { %2348 = vrot.lane.b32.xlu1 %v2345_v61, %s3263_s26  ;;  %v1141_v28 = vadd.f32 %v1140_v34, %v1139_v18  ;;  %v1167_v14 = vrot.slane %v1166_v49, 2  ;;  %v1447_v3 = vadd.f32 %v3422_v30, %v3402_v20  ;;  %v1451_v47 = vsel %vm347_vm0, %v346_v52, 0.0 }
  0x91   : > { %v1136_v45 = vadd.f32 %v1135_v10, %v1134_v1  ;;  %v1161_v32 = vadd.f32 %v1160_v63, %v1159_v21  ;;  %v1443_v39 = vadd.f32 %v1442_v44, %v3419_v29  ;;  %v1256_v58 = vrot.slane %v3683_v2, 2 }
  0x92   : > { %v1142_v60 = vrot.slane %v1141_v28, 1  ;;  %v1168_v43 = vadd.f32 %v1167_v14, %v1166_v49  ;;  %v1448_v25 = vadd.f32 %v1447_v3, %v3425_v31  ;;  %v1257_v6 = vrot.slane %v3707_v59, 2 }
  0x93   : > { %v1162_v54 = vrot.slane %v1161_v32, 1  ;;  %v1178_v37 = vsel %vm489_vm5, %v1103_v22, %v1136_v45  ;;  %v1444_v50 = vadd.f32 %v1443_v39, %v3441_v41  ;;  %v1262_v57 = vsel %vm406_vm1, %v1256_v58, 0.0  ;;  %v4368_v22 = vld [vmem:[#allocation6_spill] sm:$0xff] }
  0x94   : > { %v1143_v42 = vadd.f32 %v1142_v60, %v1141_v28  ;;  %v1169_v18 = vrot.slane %v1168_v43, 1  ;;  %v1449_v1 = vadd.f32 %v1448_v25, %v4367_v7  ;;  %v1263_v29 = vrot.slane %v1262_v57, 4 }
  0x95   : > { %v1163_v21 = vadd.f32 %v1162_v54, %v1161_v32  ;;  %v3826_v38 = vadd.f32 %v1445_v16, %v1444_v50  ;;  %v1269_v52 = vsel %vm406_vm1, %v1257_v6, 0.0  ;;  %v1283_v31 = vrot.slane %v3683_v2, 6 }
  0x96   : > { %v1170_v53 = vadd.f32 %v1169_v18, %v1168_v43  ;;  %v1179_v61 = vsel %vm489_vm5, %v1110_v33, %v1143_v42  ;;  %v1450_v34 = vadd.f32 %v1449_v1, %v4368_v22  ;;  %v1264_v41 = vadd.f32 %v1263_v29, %v1262_v57 }
  0x97   : > { %v1181_v49 = vsel %vm493_vm2, %v1178_v37, %v1163_v21  ;;  %v1467_v10 = vsel %vm406_vm1, %v3826_v38, 0.0  ;;  %v1486_v63 = vrot.slane %v3826_v38, 4  ;;  %v1270_v44 = vrot.slane %v1269_v52, 4 }
  0x98   : > { %v1182_v16 = vsel %vm493_vm2, %v1179_v61, %v1170_v53  ;;  %v1193_v28 = vrot.slane %v1181_v49, %v3415_v27  ;;  %v3838_v14 = vadd.f32 %v1451_v47, %v1450_v34  ;;  %v1468_v2 = vrot.slane %v1467_v10, 4 }
  0x99   : > { %v1216_v33 = vrot.slane %v1182_v16, %v3415_v27  ;;  %v1265_v3 = vrot.slane %v1264_v41, 2  ;;  %v1271_v45 = vadd.f32 %v1270_v44, %v1269_v52  ;;  %v1284_v32 = vrot.slane %v3696_v35, 6 }
  0x9a   : > { %v1194_v39 = vcombine.high %v1193_v28, %v1193_v28  ;;  %v1201_v58 = vrot.slane %v1193_v28, %v3415_v27  ;;  %v1469_v60 = vadd.f32 %v1468_v2, %v1467_v10  ;;  %v1487_v43 = vrot.slane %v3838_v14, 4 }
  0x9b   : > { %v1217_v25 = vcombine.high %v1216_v33, %v1216_v33  ;;  %v1224_v6 = vrot.slane %v1216_v33, %v3415_v27  ;;  %v1527_v47 = vsel %vm406_vm1, %v3838_v14, 0.0  ;;  %v1266_v54 = vadd.f32 %v1265_v3, %v1264_v41 }
  0x9c   : > { %v1208_v37 = vrot.slane %v1194_v39, %v3415_v27  ;;  %v1209_v50 = vcombine.high %v1201_v58, %v1201_v58  ;;  %v1470_v57 = vrot.slane %v1469_v60, 2  ;;  %v1488_v42 = vsel %vm434_vm4, %v1486_v63, %v1487_v43 }
  0x9d   : > { %v1231_v18 = vrot.slane %v1217_v25, %v3415_v27  ;;  %v1232_v7 = vcombine.high %v1224_v6, %v1224_v6  ;;  %v1506_v1 = vsel %vm406_vm1, %v1488_v42, 0.0  ;;  %v1528_v29 = vrot.slane %v1527_v47, 4 }
  0x9e   : > { %v2214_v21 = vcombine.low %v1201_v58, %v1208_v37  ;;  %v2215_v52 = vcombine.low %v1209_v50, %v1224_v6  ;;  %v1471_v53 = vadd.f32 %v1470_v57, %v1469_v60  ;;  %v1507_v61 = vrot.slane %v1506_v1, 4 }
  0x9f   : > { %v2216_v22 = vcombine.low %v1231_v18, %v1232_v7  ;;  %v1529_v34 = vadd.f32 %v1528_v29, %v1527_v47  ;;  %v1267_v49 = vrot.slane %v1266_v54, 1  ;;  %v1272_v41 = vrot.slane %v1271_v45, 2 }
  0xa0   : > { %v2224_v10 = vrot.slane %v2214_v21, %v3415_v27  ;;  %v2231_v44 = vrot.slane %v2215_v52, %v3415_v27  ;;  %v1472_v16 = vrot.slane %v1471_v53, 1  ;;  %v1508_v63 = vadd.f32 %v1507_v61, %v1506_v1 }
  0xa1   : > { %v1405_v28 = vcombine.high %v3782_v0, %v3782_v0  ;;  %v2238_v2 = vrot.slane %v2216_v22, %v3415_v27  ;;  %v1530_v33 = vrot.slane %v1529_v34, 2  ;;  %v1273_v3 = vadd.f32 %v1272_v41, %v1271_v45 }
  0xa2   : > { %v2246_v39 = vcombine.low %v2224_v10, %v2231_v44  ;;  %v1509_v58 = vrot.slane %v1508_v63, 2  ;;  %v1268_v60 = vadd.f32 %v1267_v49, %v1266_v54  ;;  %v1285_v43 = vsel %vm493_vm2, %v1283_v31, %v1284_v32 }
  0xa3   : > { %v2247_v25 = vcombine.low %v2238_v2, %v3811_v46  ;;  %v1473_v6 = vadd.f32 %v1472_v16, %v1471_v53  ;;  %v1531_v47 = vadd.f32 %v1530_v33, %v1529_v34  ;;  %v1286_v37 = vrot.slane %v3707_v59, 6 }
  0xa4   : > { %v2254_v50 = vrot.slane %v2246_v39, %v3415_v27  ;;  %v1510_v57 = vadd.f32 %v1509_v58, %v1508_v63  ;;  %v1287_v0 = vrot.slane %v3721_v5, 6  ;;  %v1295_v42 = vsel %vm406_vm1, %v1285_v43, 0.0  ;;  %v4369_v63 = vld [vmem:[#allocation10_spill] sm:$0xff] }
  0xa5   : > { %v2261_v45 = vrot.slane %v2247_v25, %v3415_v27  ;;  %v1532_v18 = vrot.slane %v1531_v47, 1  ;;  %v1274_v7 = vrot.slane %v1273_v3, 1  ;;  %v1296_v54 = vrot.slane %v1295_v42, 4 }
  0xa6   : > { %v1511_v1 = vrot.slane %v1510_v57, 1  ;;  %v1288_v31 = vsel %vm493_vm2, %v1286_v37, %v1287_v0  ;;  %v1316_v46 = vrot.slane %v3696_v35, 2  ;;  %v1317_v32 = vrot.slane %v3721_v5, 2 }
  0xa7   : > { %v2262_v59 = vcombine.low %v2254_v50, %v2261_v45  ;;  %v1533_v29 = vadd.f32 %v1532_v18, %v1531_v47  ;;  %v1297_v21 = vadd.f32 %v1296_v54, %v1295_v42  ;;  %v1302_v52 = vsel %vm406_vm1, %v1288_v31, 0.0 }
  0xa8   : > { %v1512_v53 = vadd.f32 %v1511_v1, %v1510_v57  ;;  %v1303_v61 = vrot.slane %v1302_v52, 4  ;;  %v1322_v22 = vsel %vm406_vm1, %v1316_v46, 0.0  ;;  %v1329_v34 = vsel %vm406_vm1, %v1317_v32, 0.0 }
  0xa9   : > { %2277 = vrot.lane.b32.xlu0 %v2262_v59, %s3262_s25  ;;  %v1275_v49 = vadd.f32 %v1274_v7, %v1273_v3  ;;  %v1298_v41 = vrot.slane %v1297_v21, 2  ;;  %v1323_v10 = vrot.slane %v1322_v22, 4  ;;  %v1330_v44 = vrot.slane %v1329_v34, 4  ;;  %v4370_v3 = vld [vmem:[#allocation13_spill] sm:$0xff] }
  0xaa   : > { %v1536_v35 = vsel %vm489_vm5, %v1473_v6, %v1512_v53  ;;  %v1304_v5 = vadd.f32 %v1303_v61, %v1302_v52  ;;  %v1419_v16 = vrot.slane %v1405_v28, %v3415_v27  ;;  %v735_v2 = vrot.slane %v4369_v63, 2 }
  0xab   : > { %v1539_v33 = vsel %vm493_vm2, %v1536_v35, %v1533_v29  ;;  %v1299_v39 = vadd.f32 %v1298_v41, %v1297_v21  ;;  %v1324_v58 = vadd.f32 %v1323_v10, %v1322_v22  ;;  %v1331_v43 = vadd.f32 %v1330_v44, %v1329_v34  ;;  %v4371_v10 = vld [vmem:[#allocation12_spill] sm:$0xff] }
  0xac   : > { %v3875_v25 = vrot.slane %v1539_v33, %v3415_v27  ;;  %v1305_v47 = vrot.slane %v1304_v5, 2  ;;  %v736_v37 = vrot.slane %v4370_v3, 2  ;;  %v741_v50 = vsel %vm406_vm1, %v735_v2, 0.0 }
  0xad   : > { %v1300_v57 = vrot.slane %v1299_v39, 1  ;;  %v1325_v6 = vrot.slane %v1324_v58, 2  ;;  %v1332_v0 = vrot.slane %v1331_v43, 2  ;;  %v742_v42 = vrot.slane %v741_v50, 4 }
  0xae   : > { %v1596_v28 = vcombine.high %v3875_v25, %v3875_v25  ;;  %v3883_v45 = vrot.slane %v3875_v25, %v3415_v27  ;;  %v1306_v18 = vadd.f32 %v1305_v47, %v1304_v5  ;;  %v2286_v7 = vcombine.low %v3791_v36, %v1419_v16 }
  0xaf   : > { %v1301_v54 = vadd.f32 %v1300_v57, %v1299_v39  ;;  %v1326_v1 = vadd.f32 %v1325_v6, %v1324_v58  ;;  %v1333_v31 = vadd.f32 %v1332_v0, %v1331_v43  ;;  %v743_v46 = vadd.f32 %v742_v42, %v741_v50  ;;  %v4372_v50 = vld [vmem:[#allocation14_spill] sm:$0xff] }
  0xb0   : > { %v1611_v32 = vcombine.high %v3883_v45, %v3883_v45  ;;  %v1307_v59 = vrot.slane %v1306_v18, 1  ;;  %v748_v29 = vsel %vm406_vm1, %v736_v37, 0.0  ;;  %v762_v21 = vrot.slane %v4369_v63, 6 }
  0xb1   : > { %v1327_v52 = vrot.slane %v1326_v1, 1  ;;  %v1334_v53 = vrot.slane %v1333_v31, 1  ;;  %v1343_v61 = vsel %vm489_vm5, %v1268_v60, %v1301_v54  ;;  %v744_v22 = vrot.slane %v743_v46, 2 }
  0xb2   : > { %v2407_v34 = vrot.slane %v1611_v32, %v3415_v27  ;;  %v1308_v36 = vadd.f32 %v1307_v59, %v1306_v18  ;;  %v749_v41 = vrot.slane %v748_v29, 4  ;;  %v763_v44 = vrot.slane %v4371_v10, 6 }
  0xb3   : > { %v1328_v35 = vadd.f32 %v1327_v52, %v1326_v1  ;;  %v1335_v5 = vadd.f32 %v1334_v53, %v1333_v31  ;;  %v745_v16 = vadd.f32 %v744_v22, %v743_v46  ;;  %v765_v2 = vrot.slane %v4370_v3, 6 }
  0xb4   : > { %v2414_v33 = vrot.slane %v2407_v34, %v3415_v27  ;;  %v1344_v39 = vsel %vm489_vm5, %v1275_v49, %v1308_v36  ;;  %v750_v58 = vadd.f32 %v749_v41, %v748_v29  ;;  %v764_v43 = vsel %vm493_vm2, %v762_v21, %v763_v44 }
  0xb5   : > { %v1346_v60 = vsel %vm493_vm2, %v1343_v61, %v1328_v35  ;;  %v1347_v47 = vsel %vm493_vm2, %v1344_v39, %v1335_v5  ;;  %v2314_v37 = vrot.slane %v2286_v7, %v3415_v27  ;;  %v766_v57 = vrot.slane %v4372_v50, 6 }
  0xb6   : > { %2417 = vrot.lane.b32.xlu1 %v2414_v33, %s3264_s10  ;;  %v1358_v6 = vrot.slane %v1346_v60, %v3415_v27  ;;  %v1381_v0 = vrot.slane %v1347_v47, %v3415_v27  ;;  %v751_v42 = vrot.slane %v750_v58, 2  ;;  %v774_v49 = vsel %vm406_vm1, %v764_v43, 0.0 }
  0xb7   : > { %v746_v18 = vrot.slane %v745_v16, 1  ;;  %v767_v54 = vsel %vm493_vm2, %v765_v2, %v766_v57  ;;  %v775_v1 = vrot.slane %v774_v49, 4  ;;  %v795_v31 = vrot.slane %v4371_v10, 2 }
  0xb8   : > { %v1359_v46 = vcombine.high %v1358_v6, %v1358_v6  ;;  %v1366_v7 = vrot.slane %v1358_v6, %v3415_v27  ;;  %v1382_v32 = vcombine.high %v1381_v0, %v1381_v0  ;;  %v1389_v59 = vrot.slane %v1381_v0, %v3415_v27 }
  0xb9   : > { %v752_v29 = vadd.f32 %v751_v42, %v750_v58  ;;  %v776_v21 = vadd.f32 %v775_v1, %v774_v49  ;;  %v781_v52 = vsel %vm406_vm1, %v767_v54, 0.0  ;;  %v796_v53 = vrot.slane %v4372_v50, 2 }
  0xba   : > { %v1373_v61 = vrot.slane %v1359_v46, %v3415_v27  ;;  %v1374_v22 = vcombine.high %v1366_v7, %v1366_v7  ;;  %v1396_v34 = vrot.slane %v1382_v32, %v3415_v27  ;;  %v1397_v36 = vcombine.high %v1389_v59, %v1389_v59 }
  0xbb   : > { %v753_v41 = vrot.slane %v752_v29, 1  ;;  %v777_v44 = vrot.slane %v776_v21, 2  ;;  %v782_v35 = vrot.slane %v781_v52, 4  ;;  %v801_v5 = vsel %vm406_vm1, %v795_v31, 0.0 }
  0xbc   : > { %v2283_v2 = vcombine.low %v1366_v7, %v1373_v61  ;;  %v2284_v33 = vcombine.low %v1374_v22, %v1389_v59  ;;  %v2285_v39 = vcombine.low %v1396_v34, %v1397_v36  ;;  %v802_v58 = vrot.slane %v801_v5, 4 }
  0xbd   : > { %v747_v43 = vadd.f32 %v746_v18, %v745_v16  ;;  %v778_v60 = vadd.f32 %v777_v44, %v776_v21  ;;  %v783_v47 = vadd.f32 %v782_v35, %v781_v52  ;;  %v808_v57 = vsel %vm406_vm1, %v796_v53, 0.0 }
  0xbe   : > { %v2293_v6 = vrot.slane %v2283_v2, %v3415_v27  ;;  %v2300_v0 = vrot.slane %v2284_v33, %v3415_v27  ;;  %v2307_v42 = vrot.slane %v2285_v39, %v3415_v27  ;;  %v803_v49 = vadd.f32 %v802_v58, %v801_v5 }
  0xbf   : > { %v754_v54 = vadd.f32 %v753_v41, %v752_v29  ;;  %v779_v1 = vrot.slane %v778_v60, 1  ;;  %v784_v46 = vrot.slane %v783_v47, 2  ;;  %v809_v31 = vrot.slane %v808_v57, 4 }
  0xc0   : > { %v2315_v7 = vcombine.low %v2293_v6, %v2300_v0  ;;  %v2316_v32 = vcombine.low %v2307_v42, %v2314_v37  ;;  %v804_v59 = vrot.slane %v803_v49, 2  ;;  %v1421_v16 = vadd.f32 %v3464_v56, %v3461_v55 }
  0xc1   : > { %v780_v18 = vadd.f32 %v779_v1, %v778_v60  ;;  %v785_v21 = vadd.f32 %v784_v46, %v783_v47  ;;  %v810_v52 = vadd.f32 %v809_v31, %v808_v57  ;;  %v1426_v53 = vadd.f32 %v3542_v15, %v3536_v9 }
  0xc2   : > { %v2323_v61 = vrot.slane %v2315_v7, %v3415_v27  ;;  %v2330_v22 = vrot.slane %v2316_v32, %v3415_v27  ;;  %v805_v29 = vadd.f32 %v804_v59, %v803_v49  ;;  %v1422_v34 = vadd.f32 %v1421_v16, %v3474_v62 }
  0xc3   : > { %v786_v36 = vrot.slane %v785_v21, 1  ;;  %v811_v41 = vrot.slane %v810_v52, 2  ;;  %v822_v37 = vsel %vm489_vm5, %v747_v43, %v780_v18  ;;  %v1427_v44 = vadd.f32 %v1426_v53, %v3561_v40  ;;  %v4373_v43 = vld [vmem:[#allocation9_spill] sm:$0xff] }
  0xc4   : > { %v2331_v55 = vcombine.low %v2323_v61, %v2330_v22  ;;  %v806_v56 = vrot.slane %v805_v29, 1  ;;  %v1423_v35 = vadd.f32 %v1422_v34, %v3523_v51  ;;  %v1431_v9 = vadd.f32 %v3591_v4, %v3588_v8 }
  0xc5   : > { %v787_v15 = vadd.f32 %v786_v36, %v785_v21  ;;  %v812_v5 = vadd.f32 %v811_v41, %v810_v52  ;;  %v1428_v2 = vadd.f32 %v1427_v44, %v3569_v48  ;;  %v1436_v62 = vadd.f32 %v3606_v26, %v3603_v23  ;;  %v4374_v48 = vld [vmem:[#allocation11_spill] sm:$0xff] }
  0xc6   : > { %2346 = vrot.lane.b32.xlu0 %v2331_v55, %s3263_s26  ;;  %v807_v33 = vadd.f32 %v806_v56, %v805_v29  ;;  %v1424_v39 = vadd.f32 %v1423_v35, %v3588_v8  ;;  %v1432_v40 = vadd.f32 %v1431_v9, %v3382_v11  ;;  %v3940_v51 = vrot.slane %v1596_v28, %v3415_v27  ;;  %s2921_s26 = sshll.u32 %s305_s24, 4  ;;  %s4287_s26 = int_to_ptr.vmem [resolvable:$true] %s2921_s26 }
  0xc7   : > { %v813_v58 = vrot.slane %v812_v5, 1  ;;  %v4375_v60 = vcombine.low %v4373_v43, %v4374_v48  ;;  %v1429_v57 = vadd.f32 %v1428_v2, %v3603_v23  ;;  %v1437_v6 = vadd.f32 %v1436_v62, %v3388_v13 }
  0xc8   : > { %v823_v8 = vsel %vm489_vm5, %v754_v54, %v787_v15  ;;  %v825_v11 = vsel %vm493_vm2, %v822_v37, %v807_v33  ;;  %v3951_v0 = vadd.f32 %v1424_v39, %v3591_v4  ;;  %v1433_v25 = vadd.f32 %v1432_v40, %v3385_v12 }
  0xc9   : > { %v2107_v47 = vrot.slane %v4375_v60, %v3415_v27  ;;  %v814_v28 = vadd.f32 %v813_v58, %v812_v5  ;;  %v837_v42 = vrot.slane %v825_v11, %v3415_v27  ;;  %v3956_v49 = vadd.f32 %v1429_v57, %v3606_v26 }
  0xca   : > { %v1438_v1 = vadd.f32 %v1437_v6, %v3394_v17  ;;  %v1434_v23 = vadd.f32 %v1433_v25, %v3399_v19  ;;  %v1453_v13 = vsel %vm406_vm1, %v3951_v0, 0.0  ;;  %v1480_v54 = vrot.slane %v3951_v0, 4 }
  0xcb   : > { %v2355_v4 = vcombine.low %v3883_v45, %v3940_v51  ;;  %v826_v12 = vsel %vm493_vm2, %v823_v8, %v814_v28  ;;  %v838_v46 = vcombine.high %v837_v42, %v837_v42  ;;  %v845_v31 = vrot.slane %v837_v42, %v3415_v27 }
  0xcc   : > { %v1439_v26 = vadd.f32 %v1438_v1, %v3402_v20  ;;  %v860_v7 = vrot.slane %v826_v12, %v3415_v27  ;;  %v3970_v17 = vadd.f32 %v1434_v23, %v3408_v24  ;;  %v1454_v19 = vrot.slane %v1453_v13, 4 }
  0xcd   : > { %v1481_v32 = vrot.slane %v3956_v49, 4  ;;  %v852_v59 = vrot.slane %v838_v46, %v3415_v27  ;;  %v853_v16 = vcombine.high %v845_v31, %v845_v31  ;;  %v1513_v21 = vsel %vm406_vm1, %v3956_v49, 0.0 }
  0xce   : > { %v3975_v18 = vadd.f32 %v1439_v26, %v3422_v30  ;;  %v861_v52 = vcombine.high %v860_v7, %v860_v7  ;;  %v868_v20 = vrot.slane %v860_v7, %v3415_v27  ;;  %v1455_v53 = vadd.f32 %v1454_v19, %v1453_v13 }
  0xcf   : > { %v1460_v24 = vsel %vm406_vm1, %v3970_v17, 0.0  ;;  %v2076_v61 = vcombine.low %v845_v31, %v852_v59  ;;  %v1482_v29 = vsel %vm434_vm4, %v1480_v54, %v1481_v32  ;;  %v1483_v34 = vrot.slane %v3970_v17, 4 }
  0xd0   : > { %v1461_v22 = vrot.slane %v1460_v24, 4  ;;  %v875_v36 = vrot.slane %v861_v52, %v3415_v27  ;;  %v876_v30 = vcombine.high %v868_v20, %v868_v20  ;;  %v2077_v41 = vcombine.low %v853_v16, %v868_v20 }
  0xd1   : > { %v1456_v37 = vrot.slane %v1455_v53, 2  ;;  %v2086_v44 = vrot.slane %v2076_v61, %v3415_v27  ;;  %v1484_v56 = vrot.slane %v3975_v18, 4  ;;  %v1492_v35 = vsel %vm406_vm1, %v1482_v29, 0.0 }
  0xd2   : > { %v1462_v55 = vadd.f32 %v1461_v22, %v1460_v24  ;;  %v2078_v9 = vcombine.low %v875_v36, %v876_v30  ;;  %v2093_v15 = vrot.slane %v2077_v41, %v3415_v27  ;;  %v1493_v2 = vrot.slane %v1492_v35, 4 }
  0xd3   : > { %v1457_v5 = vadd.f32 %v1456_v37, %v1455_v53  ;;  %v1485_v33 = vsel %vm434_vm4, %v1483_v34, %v1484_v56  ;;  %v1514_v39 = vrot.slane %v1513_v21, 4  ;;  %v1520_v40 = vsel %vm406_vm1, %v3975_v18, 0.0 }
  0xd4   : > { %v1463_v62 = vrot.slane %v1462_v55, 2  ;;  %v2100_v58 = vrot.slane %v2078_v9, %v3415_v27  ;;  %v2108_v43 = vcombine.low %v2086_v44, %v2093_v15  ;;  %v1494_v60 = vadd.f32 %v1493_v2, %v1492_v35 }
  0xd5   : > { %v1458_v48 = vrot.slane %v1457_v5, 1  ;;  %v1499_v6 = vsel %vm406_vm1, %v1485_v33, 0.0  ;;  %v1515_v8 = vadd.f32 %v1514_v39, %v1513_v21  ;;  %v1521_v11 = vrot.slane %v1520_v40, 4 }
  0xd6   : > { %v1464_v57 = vadd.f32 %v1463_v62, %v1462_v55  ;;  %v2109_v25 = vcombine.low %v2100_v58, %v2107_v47  ;;  %v2116_v28 = vrot.slane %v2108_v43, %v3415_v27  ;;  %v1495_v1 = vrot.slane %v1494_v60, 2 }
  0xd7   : > { %v1459_v42 = vadd.f32 %v1458_v48, %v1457_v5  ;;  %v1500_v13 = vrot.slane %v1499_v6, 4  ;;  %v1516_v54 = vrot.slane %v1515_v8, 2  ;;  %v1522_v12 = vadd.f32 %v1521_v11, %v1520_v40 }
  0xd8   : > { %v1465_v23 = vrot.slane %v1464_v57, 1  ;;  %v2123_v46 = vrot.slane %v2109_v25, %v3415_v27  ;;  %v1496_v31 = vadd.f32 %v1495_v1, %v1494_v60  ;;  %v1614_v26 = vrot.slane %v3826_v38, 1 }
  0xd9   : > { %v1645_v7 = vrot.slane %v3826_v38, 5  ;;  %v1501_v32 = vadd.f32 %v1500_v13, %v1499_v6  ;;  %v1517_v59 = vadd.f32 %v1516_v54, %v1515_v8  ;;  %v1523_v16 = vrot.slane %v1522_v12, 2 }
  0xda   : > { %v1466_v19 = vadd.f32 %v1465_v23, %v1464_v57  ;;  %v2124_v47 = vcombine.low %v2116_v28, %v2123_v46  ;;  %v1497_v21 = vrot.slane %v1496_v31, 1  ;;  %v1632_v52 = vsel %vm406_vm1, %v1614_v26, 0.0 }
  0xdb   : > { %v1646_v20 = vrot.slane %v3838_v14, 5  ;;  %v1502_v53 = vrot.slane %v1501_v32, 2  ;;  %v1518_v24 = vrot.slane %v1517_v59, 1  ;;  %v1524_v61 = vadd.f32 %v1523_v16, %v1522_v12 }
  0xdc   : > { %v1633_v22 = vrot.slane %v1632_v52, 4  ;;  %2139 = vrot.lane.b32.xlu1 %v2124_v47, %s3259_s22  ;;  %v1498_v29 = vadd.f32 %v1497_v21, %v1496_v31  ;;  %v1674_v36 = vrot.slane %v3838_v14, 1  ;;  %v1612_v30 = vrot.slane %v3951_v0, 1 }
  0xdd   : > { %v1647_v34 = vsel %vm596_vm3, %v1645_v7, %v1646_v20  ;;  %v1503_v41 = vadd.f32 %v1502_v53, %v1501_v32  ;;  %v1519_v37 = vadd.f32 %v1518_v24, %v1517_v59  ;;  %v1525_v44 = vrot.slane %v1524_v61, 1 }
  0xde   : > { %v1634_v55 = vadd.f32 %v1633_v22, %v1632_v52  ;;  %v1534_v56 = vsel %vm489_vm5, %v1459_v42, %v1498_v29  ;;  %v1665_v35 = vsel %vm406_vm1, %v1647_v34, 0.0  ;;  %v1692_v9 = vsel %vm406_vm1, %v1674_v36, 0.0 }
  0xdf   : > { %v1613_v15 = vrot.slane %v3970_v17, 1  ;;  %v1504_v5 = vrot.slane %v1503_v41, 1  ;;  %v1526_v2 = vadd.f32 %v1525_v44, %v1524_v61  ;;  %v1537_v62 = vsel %vm493_vm2, %v1534_v56, %v1519_v37 }
  0xe0   : > { %v1635_v33 = vrot.slane %v1634_v55, 2  ;;  %v1549_v39 = vrot.slane %v1537_v62, %v3415_v27  ;;  %v1666_v40 = vrot.slane %v1665_v35, 4  ;;  %v1693_v58 = vrot.slane %v1692_v9, 4 }
  0xe1   : > { %v1618_v43 = vsel %vm406_vm1, %v1612_v30, 0.0  ;;  %v1505_v48 = vadd.f32 %v1504_v5, %v1503_v41  ;;  %v1625_v6 = vsel %vm406_vm1, %v1613_v15, 0.0  ;;  %v1639_v52 = vrot.slane %v3951_v0, 5 }
  0xe2   : > { %v1636_v60 = vadd.f32 %v1635_v33, %v1634_v55  ;;  %v1619_v57 = vrot.slane %v1618_v43, 4  ;;  %v1550_v8 = vcombine.high %v1549_v39, %v1549_v39  ;;  %v1557_v11 = vrot.slane %v1549_v39, %v3415_v27 }
  0xe3   : > { %v1667_v25 = vadd.f32 %v1666_v40, %v1665_v35  ;;  %v1694_v28 = vadd.f32 %v1693_v58, %v1692_v9  ;;  %v1535_v42 = vsel %vm489_vm5, %v1466_v19, %v1505_v48  ;;  %v1626_v13 = vrot.slane %v1625_v6, 4 }
  0xe4   : > { %v1637_v1 = vrot.slane %v1636_v60, 1  ;;  %v1620_v23 = vadd.f32 %v1619_v57, %v1618_v43  ;;  %v1538_v54 = vsel %vm493_vm2, %v1535_v42, %v1526_v2  ;;  %v1564_v12 = vrot.slane %v1550_v8, %v3415_v27 }
  0xe5   : > { %v1565_v46 = vcombine.high %v1557_v11, %v1557_v11  ;;  %v1668_v31 = vrot.slane %v1667_v25, 2  ;;  %v1572_v26 = vrot.slane %v1538_v54, %v3415_v27  ;;  %v1695_v32 = vrot.slane %v1694_v28, 2 }
  0xe6   : > { %v1638_v7 = vadd.f32 %v1637_v1, %v1636_v60  ;;  %v1621_v59 = vrot.slane %v1620_v23, 2  ;;  %v2352_v16 = vcombine.low %v1557_v11, %v1564_v12  ;;  %v1627_v21 = vadd.f32 %v1626_v13, %v1625_v6 }
  0xe7   : > { %v1669_v47 = vadd.f32 %v1668_v31, %v1667_v25  ;;  %v1573_v19 = vcombine.high %v1572_v26, %v1572_v26  ;;  %v1580_v20 = vrot.slane %v1572_v26, %v3415_v27  ;;  %v1696_v53 = vadd.f32 %v1695_v32, %v1694_v28 }
  0xe8   : > { %v1622_v24 = vadd.f32 %v1621_v59, %v1620_v23  ;;  %v2362_v61 = vrot.slane %v2352_v16, %v3415_v27  ;;  %v1628_v29 = vrot.slane %v1627_v21, 2  ;;  %v1640_v34 = vrot.slane %v3956_v49, 5 }
  0xe9   : > { %v1670_v22 = vrot.slane %v1669_v47, 1  ;;  %v1587_v36 = vrot.slane %v1573_v19, %v3415_v27  ;;  %v1588_v30 = vcombine.high %v1580_v20, %v1580_v20  ;;  %v2353_v41 = vcombine.low %v1565_v46, %v1580_v20 }
  0xea   : > { %v1697_v37 = vrot.slane %v1696_v53, 1  ;;  %v2383_v44 = vrot.slane %v2355_v4, %v3415_v27  ;;  %v1623_v56 = vrot.slane %v1622_v24, 1  ;;  %v1641_v35 = vsel %vm596_vm3, %v1639_v52, %v1640_v34 }
  0xeb   : > { %v1671_v55 = vadd.f32 %v1670_v22, %v1669_v47  ;;  %v2354_v9 = vcombine.low %v1587_v36, %v1588_v30  ;;  %v2369_v15 = vrot.slane %v2353_v41, %v3415_v27  ;;  %v1642_v2 = vrot.slane %v3970_v17, 5 }
  0xec   : > { %v1698_v5 = vadd.f32 %v1697_v37, %v1696_v53  ;;  %v1629_v33 = vadd.f32 %v1628_v29, %v1627_v21  ;;  %v1643_v39 = vrot.slane %v3975_v18, 5  ;;  %v1651_v51 = vsel %vm406_vm1, %v1641_v35, 0.0 }
  0xed   : > { %v1701_v62 = vsel %vm489_vm5, %v1638_v7, %v1671_v55  ;;  %v2376_v40 = vrot.slane %v2354_v9, %v3415_v27  ;;  %v2384_v58 = vcombine.low %v2362_v61, %v2369_v15  ;;  %v1624_v43 = vadd.f32 %v1623_v56, %v1622_v24 }
  0xee   : > { %v1704_v45 = vsel %vm493_vm2, %v1701_v62, %v1698_v5  ;;  %v1644_v48 = vsel %vm596_vm3, %v1642_v2, %v1643_v39  ;;  %v1652_v60 = vrot.slane %v1651_v51, 4  ;;  %v1672_v11 = vrot.slane %v3956_v49, 1 }
  0xef   : > { %v1760_v4 = vrot.slane %v1704_v45, %v3415_v27  ;;  %v2385_v57 = vcombine.low %v2376_v40, %v2383_v44  ;;  %v2392_v6 = vrot.slane %v2384_v58, %v3415_v27  ;;  %v1658_v8 = vsel %vm406_vm1, %v1644_v48, 0.0 }
  0xf0   : > { %v1630_v28 = vrot.slane %v1629_v33, 1  ;;  %v1653_v42 = vadd.f32 %v1652_v60, %v1651_v51  ;;  %v1659_v1 = vrot.slane %v1658_v8, 4  ;;  %v1673_v13 = vrot.slane %v3975_v18, 1 }
  0xf1   : > { %v4040_v25 = vrot.slane %v1760_v4, %v3415_v27  ;;  %v2399_v23 = vrot.slane %v2385_v57, %v3415_v27  ;;  %v1678_v54 = vsel %vm406_vm1, %v1672_v11, 0.0  ;;  %v1779_v12 = vrot.slane %v3826_v38, 2 }
  0xf2   : > { %v1654_v31 = vrot.slane %v1653_v42, 2  ;;  %v1660_v26 = vadd.f32 %v1659_v1, %v1658_v8  ;;  %v1679_v7 = vrot.slane %v1678_v54, 4  ;;  %v1761_v59 = vcombine.high %v1760_v4, %v1760_v4 }
  0xf3   : > { %v1776_v46 = vcombine.high %v4040_v25, %v4040_v25  ;;  %v2400_v32 = vcombine.low %v2392_v6, %v2399_v23  ;;  %v1685_v16 = vsel %vm406_vm1, %v1673_v13, 0.0  ;;  %v1797_v47 = vsel %vm406_vm1, %v1779_v12, 0.0 }
  0xf4   : > { %v1655_v52 = vadd.f32 %v1654_v31, %v1653_v42  ;;  %v1661_v19 = vrot.slane %v1660_v26, 2  ;;  %v1680_v20 = vadd.f32 %v1679_v7, %v1678_v54  ;;  %v1631_v53 = vadd.f32 %v1630_v28, %v1629_v33 }
  0xf5   : > { %v2476_v21 = vrot.slane %v1776_v46, %v3415_v27  ;;  %2415 = vrot.lane.b32.xlu0 %v2400_v32, %s3264_s10  ;;  %v1686_v24 = vrot.slane %v1685_v16, 4  ;;  %v1798_v61 = vrot.slane %v1797_v47, 4  ;;  %v1810_v22 = vrot.slane %v3826_v38, 6  ;;  %s4285_s10 = scalar_lea.hbm %s4336_s8, %s3021_s23 }
  0xf6   : > { %v1656_v34 = vrot.slane %v1655_v52, 1  ;;  %v1662_v36 = vadd.f32 %v1661_v19, %v1660_v26  ;;  %v1681_v30 = vrot.slane %v1680_v20, 2  ;;  %v1775_v37 = vrot.slane %v1761_v59, %v3415_v27 }
  0xf7   : > { %v2483_v29 = vrot.slane %v2476_v21, %v3415_v27  ;;  %v1687_v41 = vadd.f32 %v1686_v24, %v1685_v16  ;;  %v1799_v44 = vadd.f32 %v1798_v61, %v1797_v47  ;;  %v1811_v55 = vrot.slane %v3838_v14, 6 }
  0xf8   : > { %v1657_v56 = vadd.f32 %v1656_v34, %v1655_v52  ;;  %v1663_v35 = vrot.slane %v1662_v36, 1  ;;  %v1682_v9 = vadd.f32 %v1681_v30, %v1680_v20  ;;  %v1839_v15 = vrot.slane %v3838_v14, 2 }
  0xf9   : > { %2486 = vrot.lane.b32.xlu1 %v2483_v29, %s3265_s12  ;;  %v1688_v38 = vrot.slane %v1687_v41, 2  ;;  %v1800_v5 = vrot.slane %v1799_v44, 2  ;;  %v1812_v2 = vsel %vm493_vm2, %v1810_v22, %v1811_v55  ;;  %v1777_v62 = vrot.slane %v3951_v0, 2 }
  0xfa   : > { %v1664_v33 = vadd.f32 %v1663_v35, %v1662_v36  ;;  %v1683_v39 = vrot.slane %v1682_v9, 1  ;;  %v1699_v40 = vsel %vm489_vm5, %v1624_v43, %v1657_v56  ;;  %v1830_v58 = vsel %vm406_vm1, %v1812_v2, 0.0 }
  0xfb   : > { %v1689_v45 = vadd.f32 %v1688_v38, %v1687_v41  ;;  %v1801_v51 = vadd.f32 %v1800_v5, %v1799_v44  ;;  %v1831_v4 = vrot.slane %v1830_v58, 4  ;;  %v1857_v48 = vsel %vm406_vm1, %v1839_v15, 0.0 }
  0xfc   : > { %v1684_v60 = vadd.f32 %v1683_v39, %v1682_v9  ;;  %v1700_v14 = vsel %vm489_vm5, %v1631_v53, %v1664_v33  ;;  %v1858_v57 = vrot.slane %v1857_v48, 4  ;;  %v1778_v6 = vrot.slane %v3970_v17, 2 }
  0xfd   : > { %v1690_v8 = vrot.slane %v1689_v45, 1  ;;  %v1802_v11 = vrot.slane %v1801_v51, 1  ;;  %v1832_v28 = vadd.f32 %v1831_v4, %v1830_v58  ;;  %v1783_v42 = vsel %vm406_vm1, %v1777_v62, 0.0 }
  0xfe   : > { %v1702_v43 = vsel %vm493_vm2, %v1699_v40, %v1684_v60  ;;  %v1859_v1 = vadd.f32 %v1858_v57, %v1857_v48  ;;  %v1784_v23 = vrot.slane %v1783_v42, 4  ;;  %v1790_v13 = vsel %vm406_vm1, %v1778_v6, 0.0 }
  0xff   : > { %v1691_v54 = vadd.f32 %v1690_v8, %v1689_v45  ;;  %v1714_v12 = vrot.slane %v1702_v43, %v3415_v27  ;;  %v2424_v46 = vcombine.low %v4040_v25, %v1775_v37  ;;  %v1833_v31 = vrot.slane %v1832_v28, 2 }
 0x100   : > { %v1803_v26 = vadd.f32 %v1802_v11, %v1801_v51  ;;  %v1860_v7 = vrot.slane %v1859_v1, 2  ;;  %v1785_v32 = vadd.f32 %v1784_v23, %v1783_v42  ;;  %v1791_v59 = vrot.slane %v1790_v13, 4 }
 0x101   : > { %v1703_v16 = vsel %vm493_vm2, %v1700_v14, %v1691_v54  ;;  %v1715_v47 = vcombine.high %v1714_v12, %v1714_v12  ;;  %v1722_v21 = vrot.slane %v1714_v12, %v3415_v27  ;;  %v1834_v52 = vadd.f32 %v1833_v31, %v1832_v28 }
 0x102   : > { %v1737_v19 = vrot.slane %v1703_v16, %v3415_v27  ;;  %v1861_v20 = vadd.f32 %v1860_v7, %v1859_v1  ;;  %v1792_v53 = vadd.f32 %v1791_v59, %v1790_v13  ;;  %v1804_v24 = vrot.slane %v3951_v0, 6 }
 0x103   : > { %v1729_v61 = vrot.slane %v1715_v47, %v3415_v27  ;;  %v1730_v25 = vcombine.high %v1722_v21, %v1722_v21  ;;  %v1835_v22 = vrot.slane %v1834_v52, 1  ;;  %v1805_v29 = vrot.slane %v3956_v49, 6 }
 0x104   : > { %v1738_v34 = vcombine.high %v1737_v19, %v1737_v19  ;;  %v1745_v36 = vrot.slane %v1737_v19, %v3415_v27  ;;  %v1862_v30 = vrot.slane %v1861_v20, 1  ;;  %v2452_v37 = vrot.slane %v2424_v46, %v3415_v27 }
 0x105   : > { %v2421_v41 = vcombine.low %v1722_v21, %v1729_v61  ;;  %v1836_v44 = vadd.f32 %v1835_v22, %v1834_v52  ;;  %v1786_v55 = vrot.slane %v1785_v32, 2  ;;  %v1793_v5 = vrot.slane %v1792_v53, 2 }
 0x106   : > { %v1752_v56 = vrot.slane %v1738_v34, %v3415_v27  ;;  %v1753_v35 = vcombine.high %v1745_v36, %v1745_v36  ;;  %v2422_v9 = vcombine.low %v1730_v25, %v1745_v36  ;;  %v1863_v0 = vadd.f32 %v1862_v30, %v1861_v20 }
 0x107   : > { %v2431_v15 = vrot.slane %v2421_v41, %v3415_v27  ;;  %v1866_v38 = vsel %vm489_vm5, %v1803_v26, %v1836_v44  ;;  %v1806_v2 = vsel %vm493_vm2, %v1804_v24, %v1805_v29  ;;  %v1807_v40 = vrot.slane %v3970_v17, 6 }
 0x108   : > { %v2423_v62 = vcombine.low %v1752_v56, %v1753_v35  ;;  %v2438_v33 = vrot.slane %v2422_v9, %v3415_v27  ;;  %v1869_v39 = vsel %vm493_vm2, %v1866_v38, %v1863_v0  ;;  %v1808_v45 = vrot.slane %v3975_v18, 6 }
 0x109   : > { %v1925_v58 = vrot.slane %v1869_v39, %v3415_v27  ;;  %v1816_v48 = vsel %vm406_vm1, %v1806_v2, 0.0  ;;  %v1837_v60 = vrot.slane %v3956_v49, 2  ;;  %v1787_v57 = vadd.f32 %v1786_v55, %v1785_v32 }
 0x10a   : > { %v2445_v51 = vrot.slane %v2423_v62, %v3415_v27  ;;  %v2453_v4 = vcombine.low %v2431_v15, %v2438_v33  ;;  %v1794_v6 = vadd.f32 %v1793_v5, %v1792_v53  ;;  %v1809_v8 = vsel %vm493_vm2, %v1807_v40, %v1808_v45 }
 0x10b   : > { %v4091_v14 = vrot.slane %v1925_v58, %v3415_v27  ;;  %v1817_v28 = vrot.slane %v1816_v48, 4  ;;  %v1823_v42 = vsel %vm406_vm1, %v1809_v8, 0.0  ;;  %v1838_v23 = vrot.slane %v3975_v18, 2 }
 0x10c   : > { %v2454_v11 = vcombine.low %v2445_v51, %v2452_v37  ;;  %v2461_v17 = vrot.slane %v2453_v4, %v3415_v27  ;;  %v1824_v1 = vrot.slane %v1823_v42, 4  ;;  %v1843_v49 = vsel %vm406_vm1, %v1837_v60, 0.0 }
 0x10d   : > { %v1941_v43 = vcombine.high %v4091_v14, %v4091_v14  ;;  %v1818_v54 = vadd.f32 %v1817_v28, %v1816_v48  ;;  %v1844_v12 = vrot.slane %v1843_v49, 4  ;;  %v1788_v31 = vrot.slane %v1787_v57, 1 }
 0x10e   : > { %v2468_v13 = vrot.slane %v2454_v11, %v3415_v27  ;;  %v1825_v26 = vadd.f32 %v1824_v1, %v1823_v42  ;;  %v1850_v7 = vsel %vm406_vm1, %v1838_v23, 0.0  ;;  %v1795_v52 = vrot.slane %v1794_v6, 1 }
 0x10f   : > { %v2545_v46 = vrot.slane %v1941_v43, %v3415_v27  ;;  %v1819_v59 = vrot.slane %v1818_v54, 2  ;;  %v1845_v16 = vadd.f32 %v1844_v12, %v1843_v49  ;;  %v1851_v47 = vrot.slane %v1850_v7, 4  ;;  %v2585_v12 = vld [vmem:[%s4329_s1 + $0x8] sm:$0xff] }
 0x110   : > { %v2469_v32 = vcombine.low %v2461_v17, %v2468_v13  ;;  %v1826_v18 = vrot.slane %v1825_v26, 2  ;;  %v1789_v61 = vadd.f32 %v1788_v31, %v1787_v57  ;;  %v1796_v34 = vadd.f32 %v1795_v52, %v1794_v6  ;;  %v2587_v31 = vld [vmem:[%s4329_s1 + $0x18] sm:$0xff] }
 0x111   : > { %v2552_v21 = vrot.slane %v2545_v46, %v3415_v27  ;;  %v1820_v19 = vadd.f32 %v1819_v59, %v1818_v54  ;;  %v1846_v20 = vrot.slane %v1845_v16, 2  ;;  %v1852_v53 = vadd.f32 %v1851_v47, %v1850_v7  ;;  %v2584_v54 = vld [vmem:[%s4329_s1] sm:$0xff]  ;;  %v2586_v46 = vld [vmem:[%s4329_s1 + $0x10] sm:$0xff]  ;;  %v4376_v59 = vld [vmem:[#allocation8_spill] sm:$0xff] }
 0x112   : > { %2484 = vrot.lane.b32.xlu0 %v2469_v32, %s3265_s12  ;;  %v1827_v24 = vadd.f32 %v1826_v18, %v1825_v26  ;;  %v1926_v30 = vcombine.high %v1925_v58, %v1925_v58  ;;  %v3107_v26 = vpack.c.bf16 %v2585_v12, %v2584_v54  ;;  %v3111_v7 = vpack.c.bf16 %v2587_v31, %v2586_v46  ;;  %v2588_v32 = vld [vmem:[%s4329_s1 + $0x20] sm:$0xf]  ;;  %s2905_s12 = scalar_lea.sflag [#allocation3], %s303_s19 }
 0x113   : > { %2555 = vrot.lane.b32.xlu1 %v2552_v21, %s3266_s13  ;;  %v1821_v25 = vrot.slane %v1820_v19, 1  ;;  %v1847_v22 = vadd.f32 %v1846_v20, %v1845_v16  ;;  %v1853_v29 = vrot.slane %v1852_v53, 2  ;;  %v442_v16 = vrot.slane %v4376_v59, 4  ;;  %v4377_v47 = vld [vmem:[#allocation7_spill] sm:$0xff] }
 0x114   : > { %v1828_v36 = vrot.slane %v1827_v24, 1  ;;  %v1940_v5 = vrot.slane %v1926_v30, %v3415_v27  ;;  %3108 = vmatprep.subr.bf16.mxu1 %v3107_v26  ;;  %v441_v21 = vrot.slane %v4377_v47, 4  ;;  %v436_v52 = vrot.slane %v4371_v10, 4 }
 0x115   : > { %v1822_v41 = vadd.f32 %v1821_v25, %v1820_v19  ;;  %v1848_v37 = vrot.slane %v1847_v22, 1  ;;  %v1854_v44 = vadd.f32 %v1853_v29, %v1852_v53  ;;  %3110 = vmatpush3.bf16.msra.mxu1 %v3107_v26  ;;  %v438_v18 = vrot.slane %v4370_v3, 4 }
 0x116   : > { %v1829_v55 = vadd.f32 %v1828_v36, %v1827_v24  ;;  %v2493_v58 = vcombine.low %v4091_v14, %v1940_v5  ;;  %3112 = vmatprep.subr.bf16.mxu1 %v3111_v7  ;;  %v439_v19 = vrot.slane %v4372_v50, 4  ;;  %v435_v20 = vrot.slane %v4369_v63, 4 }
 0x117   : > { %v1849_v56 = vadd.f32 %v1848_v37, %v1847_v22  ;;  %v1855_v35 = vrot.slane %v1854_v44, 1  ;;  %v1864_v9 = vsel %vm489_vm5, %v1789_v61, %v1822_v41  ;;  %v443_v53 = vsel %vm434_vm4, %v441_v21, %v442_v16 }
 0x118   : > { %v1865_v0 = vsel %vm489_vm5, %v1796_v34, %v1829_v55  ;;  %v2521_v42 = vrot.slane %v2493_v58, %v3415_v27  ;;  %v440_v24 = vsel %vm434_vm4, %v438_v18, %v439_v19  ;;  %v437_v61 = vsel %vm434_vm4, %v435_v20, %v436_v52 }
 0x119   : > { %v1856_v15 = vadd.f32 %v1855_v35, %v1854_v44  ;;  %v1867_v38 = vsel %vm493_vm2, %v1864_v9, %v1849_v56  ;;  %3114 = vmatpush3.bf16.msra.mxu1 %v3111_v7  ;;  %v421_v25 = vsel %vm406_vm1, %v4377_v47, 0.0  ;;  %v461_v22 = vsel %vm406_vm1, %v443_v53, 0.0 }
 0x11a   : > { %v1879_v2 = vrot.slane %v1867_v38, %v3415_v27  ;;  %3060 = vmatprep.subr.msk.mxu1 %vm434_vm4, %v2588_v32  ;;  %v414_v29 = vsel %vm406_vm1, %v4370_v3, 0.0  ;;  %v454_v34 = vsel %vm406_vm1, %v440_v24, 0.0  ;;  %v407_v36 = vsel %vm406_vm1, %v4369_v63, 0.0 }
 0x11b   : > { %v1868_v62 = vsel %vm493_vm2, %v1865_v0, %v1856_v15  ;;  %v447_v30 = vsel %vm406_vm1, %v437_v61, 0.0  ;;  %v482_v41 = vsel %vm406_vm1, %v4376_v59, 0.0  ;;  %v422_v37 = vrot.slane %v421_v25, 4 }
 0x11c   : > { %v1880_v33 = vcombine.high %v1879_v2, %v1879_v2  ;;  %v1887_v39 = vrot.slane %v1879_v2, %v3415_v27  ;;  %v1902_v40 = vrot.slane %v1868_v62, %v3415_v27  ;;  %v462_v44 = vrot.slane %v461_v22, 4 }
 0x11d   : > { %3061 = vmatpush3.msk.msra.mxu1 %vm434_vm4, %v2588_v32  ;;  %v415_v55 = vrot.slane %v414_v29, 4  ;;  %v468_v56 = vsel %vm406_vm1, %v4371_v10, 0.0  ;;  %v455_v35 = vrot.slane %v454_v34, 4  ;;  %v475_v3 = vsel %vm406_vm1, %v4372_v50, 0.0 }
 0x11e   : > { %v1894_v45 = vrot.slane %v1880_v33, %v3415_v27  ;;  %v1895_v51 = vcombine.high %v1887_v39, %v1887_v39  ;;  %v1903_v4 = vcombine.high %v1902_v40, %v1902_v40  ;;  %v1910_v48 = vrot.slane %v1902_v40, %v3415_v27 }
 0x11f   : > { %v408_v9 = vrot.slane %v407_v36, 4  ;;  %v448_v0 = vrot.slane %v447_v30, 4  ;;  %v483_v15 = vrot.slane %v482_v41, 4  ;;  %v423_v38 = vadd.f32 %v422_v37, %v421_v25  ;;  %v2142_v37 = vpop.permute.xlu1 %2141 }
 0x120   : > { %v1917_v60 = vrot.slane %v1903_v4, %v3415_v27  ;;  %v1918_v57 = vcombine.high %v1910_v48, %v1910_v48  ;;  %v2490_v6 = vcombine.low %v1887_v39, %v1894_v45  ;;  %v2491_v8 = vcombine.low %v1895_v51, %v1910_v48 }
 0x121   : > { %v463_v63 = vadd.f32 %v462_v44, %v461_v22  ;;  %v469_v5 = vrot.slane %v468_v56, 4  ;;  %v476_v2 = vrot.slane %v475_v3, 4  ;;  %v416_v62 = vadd.f32 %v415_v55, %v414_v29 }
 0x122   : > { %v2492_v11 = vcombine.low %v1917_v60, %v1918_v57  ;;  %v2500_v17 = vrot.slane %v2490_v6, %v3415_v27  ;;  %v2507_v28 = vrot.slane %v2491_v8, %v3415_v27  ;;  %v456_v33 = vadd.f32 %v455_v35, %v454_v34 }
 0x123   : > { %v409_v39 = vadd.f32 %v408_v9, %v407_v36  ;;  %v449_v40 = vadd.f32 %v448_v0, %v447_v30  ;;  %v484_v58 = vadd.f32 %v483_v15, %v482_v41  ;;  %v424_v45 = vrot.slane %v423_v38, 2  ;;  %v2073_v15 = vpop.permute.xlu0 %2072 }
 0x124   : > { %v2514_v14 = vrot.slane %v2492_v11, %v3415_v27  ;;  %v2522_v43 = vcombine.low %v2500_v17, %v2507_v28  ;;  %v464_v51 = vrot.slane %v463_v63, 2  ;;  %v470_v4 = vadd.f32 %v469_v5, %v468_v56 }
 0x125   : > { %v477_v10 = vadd.f32 %v476_v2, %v475_v3  ;;  %v417_v48 = vrot.slane %v416_v62, 2  ;;  %v457_v60 = vrot.slane %v456_v33, 2  ;;  %v410_v57 = vrot.slane %v409_v39, 2 }
 0x126   : > { %v2523_v1 = vcombine.low %v2514_v14, %v2521_v42  ;;  %v2530_v23 = vrot.slane %v2522_v43, %v3415_v27  ;;  %v450_v50 = vrot.slane %v449_v40, 2  ;;  %v485_v6 = vrot.slane %v484_v58, 2 }
 0x127   : > { %v425_v8 = vadd.f32 %v424_v45, %v423_v38  ;;  %v465_v11 = vadd.f32 %v464_v51, %v463_v63  ;;  %v471_v17 = vrot.slane %v470_v4, 2  ;;  %v478_v28 = vrot.slane %v477_v10, 2  ;;  %v2211_v38 = vpop.permute.xlu1 %2210  ;;  %v2071_v45 = vpop.permute.xlu0 %2070 }
 0x128   : > { %v2537_v49 = vrot.slane %v2523_v1, %v3415_v27  ;;  %v418_v42 = vadd.f32 %v417_v48, %v416_v62  ;;  %v458_v14 = vadd.f32 %v457_v60, %v456_v33  ;;  %v411_v43 = vadd.f32 %v410_v57, %v409_v39 }
 0x129   : > { %v451_v1 = vadd.f32 %v450_v50, %v449_v40  ;;  %v472_v54 = vadd.f32 %v471_v17, %v470_v4  ;;  %v479_v12 = vadd.f32 %v478_v28, %v477_v10  ;;  %vm2783_vm1 = vcmask 260096  }
 0x12a   : > { %v2538_v13 = vcombine.low %v2530_v23, %v2537_v49  ;;  %v486_v23 = vadd.f32 %v485_v6, %v484_v58  ;;  %v426_v49 = vrot.slane %v425_v8, 1  ;;  %v419_v46 = vrot.slane %v418_v42, 1 }
 0x12b   : > { %v459_v31 = vrot.slane %v458_v14, 1  ;;  %v412_v26 = vrot.slane %v411_v43, 1  ;;  %v452_v7 = vrot.slane %v451_v1, 1  ;;  %v473_v47 = vrot.slane %v472_v54, 1  ;;  %v2280_v10 = vpop.permute.xlu1 %2279  ;;  %v2209_v6 = vpop.permute.xlu0 %2208 }
 0x12c   : > { %2553 = vrot.lane.b32.xlu0 %v2538_v13, %s3266_s13  ;;  %v466_v13 = vrot.slane %v465_v11, 1  ;;  %v487_v32 = vrot.slane %v486_v23, 1  ;;  %v427_v59 = vadd.f32 %v426_v49, %v425_v8  ;;  %v480_v21 = vrot.slane %v479_v12, 1 }
 0x12d   : > { %v420_v52 = vadd.f32 %v419_v46, %v418_v42  ;;  %v460_v18 = vadd.f32 %v459_v31, %v458_v14  ;;  %v413_v19 = vadd.f32 %v412_v26, %v411_v43  ;;  %v453_v20 = vadd.f32 %v452_v7, %v451_v1 }
 0x12e   : > { %v467_v16 = vadd.f32 %v466_v13, %v465_v11  ;;  %v488_v53 = vadd.f32 %v487_v32, %v486_v23  ;;  %v474_v61 = vadd.f32 %v473_v47, %v472_v54  ;;  %v481_v25 = vadd.f32 %v480_v21, %v479_v12 }
 0x12f   : > { %v491_v22 = vsel %vm489_vm5, %v420_v52, %v460_v18  ;;  %v490_v29 = vsel %vm489_vm5, %v413_v19, %v453_v20  ;;  %v2349_v8 = vpop.permute.xlu1 %2348  ;;  %v2278_v14 = vpop.permute.xlu0 %2277  ;;  %vm2804_vm4 = vcmask 523264  }
 0x130   : > { %v492_v24 = vsel %vm489_vm5, %v427_v59, %v467_v16  ;;  %v495_v36 = vsel %vm493_vm2, %v491_v22, %v481_v25  ;;  %v494_v30 = vsel %vm493_vm2, %v490_v29, %v474_v61  ;;  %vm2825_vm5 = vcmask 785408  }
 0x131   : > { %v496_v34 = vsel %vm493_vm2, %v492_v24, %v488_v53  ;;  %v529_v44 = vrot.slane %v495_v36, %v3415_v27  ;;  %v506_v55 = vrot.slane %v494_v30, %v3415_v27  ;;  %vm2790_vm2 = vcmask 1046528  }
 0x132   : > { %v552_v41 = vrot.slane %v496_v34, %v3415_v27 }
 0x133   : > { %v530_v35 = vcombine.high %v529_v44, %v529_v44  ;;  %v537_v3 = vrot.slane %v529_v44, %v3415_v27  ;;  %v507_v9 = vcombine.high %v506_v55, %v506_v55  ;;  %v514_v0 = vrot.slane %v506_v55, %v3415_v27  ;;  %v2418_v43 = vpop.permute.xlu1 %2417  ;;  %v2698_v44 = vld [vmem:[%s4331_s3 + $0x10] sm:$0xff] }
 0x134   : > { %v553_v56 = vcombine.high %v552_v41, %v552_v41  ;;  %v560_v63 = vrot.slane %v552_v41, %v3415_v27  ;;  %v2696_v41 = vld [vmem:[%s4331_s3] sm:$0xff]  ;;  %v3267_v55 = vmov 0.0|0.0  }
 0x135   : > { %v544_v2 = vrot.slane %v530_v35, %v3415_v27  ;;  %v545_v62 = vcombine.high %v537_v3, %v537_v3  ;;  %v521_v33 = vrot.slane %v507_v9, %v3415_v27  ;;  %v522_v39 = vcombine.high %v514_v0, %v514_v0  ;;  %3115 = vmatprep.subr.bf16.mxu1 %v3267_v55  ;;  %v2699_v35 = vld [vmem:[%s4331_s3 + $0x18] sm:$0xff]  ;;  %v2700_v9 = vld [vmem:[%s4331_s3 + $0x20] sm:$0xff] }
 0x136   : > { %v567_v5 = vrot.slane %v553_v56, %v3415_v27  ;;  %v568_v1 = vcombine.high %v560_v63, %v560_v63  ;;  %3124 = vmatprep.subr.bf16.mxu0 %v3267_v55 }
 0x137   : > { %v1944_v40 = vcombine.low %v544_v2, %v545_v62  ;;  %v1942_v51 = vcombine.low %v514_v0, %v521_v33  ;;  %v1943_v4 = vcombine.low %v522_v39, %v537_v3  ;;  %v3119_v3 = vpack.c.bf16 %v2699_v35, %v2698_v44  ;;  %v2701_v0 = vld [vmem:[%s4331_s3 + $0x28] sm:$0xff] }
 0x138   : > { %v1945_v58 = vcombine.low %v560_v63, %v567_v5  ;;  %v1997_v49 = vrot.slane %v568_v1, %v3415_v27  ;;  %v2347_v13 = vpop.permute.xlu0 %2346  ;;  %v3012_v63 = vld [vmem:[%s4330_s2] ss:$0 sm:$0xff] }
 0x139   : > { %v1966_v48 = vrot.slane %v1944_v40, %v3415_v27  ;;  %v1952_v57 = vrot.slane %v1942_v51, %v3415_v27  ;;  %v1959_v50 = vrot.slane %v1943_v4, %v3415_v27 }
 0x13a   : > { %v1973_v60 = vrot.slane %v1945_v58, %v3415_v27  ;;  %v2004_v46 = vrot.slane %v1997_v49, %v3415_v27  ;;  %v2815_v49 = vld [vmem:[%s4333_s5 + $0x48] sm:$0xff] }
 0x13b   : > { %v1974_v17 = vcombine.low %v1952_v57, %v1959_v50  ;;  %v2807_v57 = vld [vmem:[%s4333_s5 + $0x8] sm:$0xff]  ;;  %v2808_v50 = vld [vmem:[%s4333_s5 + $0x10] sm:$0xff] }
 0x13c   : > { %v1975_v11 = vcombine.low %v1966_v48, %v1973_v60  ;;  %v2560_v32 = vsel %vm347_vm0, %v2004_v46, %v2073_v15  ;;  %v3122_v15 = vpack.c.bf16 %v2701_v0, %v2700_v9  ;;  %v2806_v60 = vld [vmem:[%s4333_s5] sm:$0xff] }
 0x13d   : > { %v1982_v42 = vrot.slane %v1974_v17, %v3415_v27  ;;  %v2563_v47 = vsel %vm2561_vm6, %v2560_v32, %v2142_v37  ;;  %v2697_v37 = vld [vmem:[%s4331_s3 + $0x8] sm:$0xff]  ;;  %v2810_v17 = vld [vmem:[%s4333_s5 + $0x20] sm:$0xff] }
 0x13e   : > { %v1989_v28 = vrot.slane %v1975_v11, %v3415_v27  ;;  %v2566_v18 = vsel %vm2564_vm7, %v2563_v47, %v2211_v38  ;;  %v3116_v56 = vpack.c.bf16 %v2697_v37, %v2696_v41  ;;  %v3269_v38 = vmov 0.0  }
 0x13f   : > { %v2569_v19 = vsel %vm2567_vm8, %v2566_v18, %v2280_v10  ;;  %3104 = vmatprep.mubr.msk.f32.mxu0 %vm3268_vm14, %v3269_v38 }
 0x140   : > { %v1990_v23 = vcombine.low %v1982_v42, %v1989_v28  ;;  %v2572_v27 = vsel %vm2570_vm9, %v2569_v19, %v2349_v8  ;;  %v2809_v8 = vld [vmem:[%s4333_s5 + $0x18] sm:$0xff]  ;;  %v2811_v28 = vld [vmem:[%s4333_s5 + $0x28] sm:$0xff] }
 0x141   : > { %v2575_v24 = vsel %vm2573_vm10, %v2572_v27, %v2418_v43  ;;  %v3128_v11 = vpack.c.bf16 %v2809_v8, %v2808_v50  ;;  %v3131_v42 = vpack.c.bf16 %v2811_v28, %v2810_v17  ;;  %v2813_v43 = vld [vmem:[%s4333_s5 + $0x38] sm:$0xff] }
 0x142   : > { %v2559_v12 = vsel %vm347_vm0, %v1990_v23, %v2071_v45  ;;  %vm2709_vm0 = vcmask 392192   ;;  %v2814_v23 = vld [vmem:[%s4333_s5 + $0x40] sm:$0xff] }
 0x14e   : > { %v2140_v54 = vpop.permute.xlu1 %2139 }
 0x14f   : > { %v2562_v31 = vsel %vm2561_vm6, %v2559_v12, %v2140_v54  ;;  %v2816_v54 = vld [vmem:[%s4333_s5 + $0x50] sm:$0xff]  ;;  %v2817_v12 = vld [vmem:[%s4333_s5 + $0x58] sm:$0xff] }
 0x150   : > { %v2565_v26 = vsel %vm2564_vm7, %v2562_v31, %v2209_v6  ;;  %v3125_v6 = vpack.c.bf16 %v2807_v57, %v2806_v60  ;;  %v3140_v46 = vpack.c.bf16 %v2817_v12, %v2816_v54  ;;  %v3016_v31 = vld [vmem:[%s4332_s4] ss:$0 sm:$0xff] }
 0x151   : > { %v2568_v59 = vsel %vm2567_vm8, %v2565_v26, %v2278_v14  ;;  %v2812_v14 = vld [vmem:[%s4333_s5 + $0x30] sm:$0xff] }
 0x152   : > { %v2571_v21 = vsel %vm2570_vm9, %v2568_v59, %v2347_v13  ;;  %3126 = vmatpush3.bf16.msra.mxu0 %v3125_v6  ;;  %v3134_v1 = vpack.c.bf16 %v2813_v43, %v2812_v14  ;;  %v3137_v13 = vpack.c.bf16 %v2815_v49, %v2814_v23 }
 0x153   : > { %3127 = vmatprep.subr.bf16.mxu0 %v3267_v55 }
 0x156   : > { %3129 = vmatpush3.bf16.msra.mxu0 %v3128_v11 }
 0x157   : > { %3130 = vmatprep.subr.bf16.mxu0 %v3267_v55 }
 0x15a   : > { %3132 = vmatpush3.bf16.msra.mxu0 %v3131_v42 }
 0x15b   : > { %3133 = vmatprep.subr.bf16.mxu0 %v3267_v55 }
 0x15e   : > { %3135 = vmatpush3.bf16.msra.mxu0 %v3134_v1 }
 0x15f   : > { %3136 = vmatprep.subr.bf16.mxu0 %v3267_v55 }
 0x162   : > { %3138 = vmatpush3.bf16.msra.mxu0 %v3137_v13 }
 0x163   : > { %3139 = vmatprep.subr.bf16.mxu0 %v3267_v55 }
 0x166   : > { %3141 = vmatpush3.bf16.msra.mxu0 %v3140_v46 }
 0x167   : > { %v2416_v7 = vpop.permute.xlu0 %2415 }
 0x168   : > { %v2574_v20 = vsel %vm2573_vm10, %v2571_v21, %v2416_v7 }
 0x16b   : > { %v2487_v16 = vpop.permute.xlu1 %2486 }
 0x16c   : > { %v2578_v61 = vsel %vm2576_vm11, %v2575_v24, %v2487_v16 }
 0x184   : > { %v2485_v52 = vpop.permute.xlu0 %2484 }
 0x185   : > { %v2556_v53 = vpop.permute.xlu1 %2555  ;;  %v2577_v25 = vsel %vm2576_vm11, %v2574_v20, %v2485_v52 }
 0x186   : > { %v2581_v22 = vsel %vm2579_vm12, %v2578_v61, %v2556_v53 }
 0x187   : > { %v2583_v30 = vmul.f32 0.027777778, %v2581_v22 }
 0x19e   : > { %v2554_v29 = vpop.permute.xlu0 %2553 }
 0x19f   : > { %v2580_v34 = vsel %vm2579_vm12, %v2577_v25, %v2554_v29  ;;  %v3018_v25 = vld [vmem:[%s4334_s6] ss:$0 sm:$0xff] }
 0x1a0   : > { %v2582_v36 = vmul.f32 0.027777778, %v2580_v34 }
 0x1a2   : > { %3062 = vmatprep.mubr.msk.f32.mxu1 %vm2596_vm13, %v2582_v36 }
 0x1a3   : > { %3063 = vmatmul.mubr.msk.f32.vlgmr.msra.gmra.mrb[0].mxu1 %vm2596_vm13, %v2583_v30 }
 0x1a4   : > { %3117 = vmatpush3.bf16.msra.mxu1 %v3116_v56  ;;  %3077 = vmatprep.mubr.msk.f32.mxu1 %vm3268_vm14, %v3269_v38 }
 0x1a5   : > { %3118 = vmatprep.subr.bf16.mxu1 %v3267_v55 }
 0x1a8   : > { %3120 = vmatpush3.bf16.msra.mxu1 %v3119_v3 }
 0x1a9   : > { %3121 = vmatprep.subr.bf16.mxu1 %v3267_v55 }
 0x1ac   : > { %3123 = vmatpush3.bf16.msra.mxu1 %v3122_v15 }
 0x276   : > { %v3064_v5 = vpop.f32.mrb[0].mxu1 }
 0x277   : > { %v2678_v2 = vadd.f32 %v3064_v5, %v3012_v63  ;;  %v2672_v62 = vpop.f32.mrb[1].mxu1 }
 0x278   : > { %v2673_v33 = vadd.f32 %v3012_v63, %v2672_v62 }
 0x279   : > { %v2689_v39 = vrot.slane %v2678_v2, 2 }
 0x27a   : > { %v2688_v40 = vrot.slane %v2673_v33, 2  ;;  %v2682_v58 = vrot.slane %v2673_v33, 1 }
 0x27c   : > { %2683 = vrot.lane.b32.xlu0 %v2682_v58, %s3262_s25  ;;  %v2690_v45 = vsel %vm2687_vm15, %v2688_v40, %v2689_v39 }
 0x27d   : > { %2691 = vrot.lane.b32.xlu1 %v2690_v45, %s3266_s13 }
 0x2ee   : > { %v2684_v51 = vpop.permute.xlu0 %2683 }
 0x2ef   : > { %v2694_v4 = vsel %vm2567_vm8, %v2673_v33, %v2684_v51  ;;  %v2692_v10 = vpop.permute.xlu1 %2691 }
 0x2f0   : > { %v2695_v48 = vsel %vm2579_vm12, %v2694_v4, %v2692_v10 }
 0x2f1   : > { %3078 = vmatmul.mubr.msk.f32.vlgmr.msra.gmra.mrb[2].mxu1 %vm2709_vm0, %v2695_v48 }
 0x3c4   : > { %v2779_v26 = vpop.f32.mrb[2].mxu1 }
 0x3c5   : > { %v2780_v7 = vadd.f32 %v3016_v31, %v2779_v26  ;;  %v3079_v32 = vpop.f32.mrb[3].mxu1 }
 0x3c7   : > { %2784 = vst.msk [vmem:[%s314_s18] sm:$0x7f] %vm2783_vm1, %v2780_v7  ;;  %v2786_v59 = vrot.slane %v2780_v7, 5  ;;  %s3194_s18 = scalar_lea.vmem %s4287_s26, 128 }
 0x3c8   : > { %p3195_p11 = scmp.ne.s32.totalorder %s4287_s26, %s3194_s18 }
 0x3c9   : > { %v2788_v16 = vsel %vm596_vm3, 0.0, %v2786_v59  ;;  %v2798_v47 = vrot.slane %v2786_v59, 2  ;;  %v2792_v21 = vrot.slane %v2786_v59, 1 }
 0x3ca   : > { %v2797_v52 = vrot.slane %v2788_v16, 2  ;;  %v2791_v18 = vrot.slane %v2788_v16, 1  ;;  %p3196_p12 = pnand %p3195_p11, %p3355_p5 }
 0x3cc   : > { %v2799_v19 = vsel %vm2687_vm15, %v2797_v52, %v2798_v47  ;;  %v2793_v27 = vsel %vm2790_vm2, %v2791_v18, %v2792_v21  ;;  %p3197_p13 = pneg %p3196_p12 }
 0x3cd   : > { %2800 = vrot.lane.b32.xlu1 %v2799_v19, %s3270_s17  ;;  %2794 = vrot.lane.b32.xlu0 %v2793_v27, %s3266_s13  ;;  %s3198_s17 = sshll.u32 %s3271_s9, 4  ;;  %s3199_s17 = int_to_ptr.vmem [resolvable:$false] %s3198_s17 }
 0x3ce   : > { %s3200_s20 = scalar_lea.vmem %s3199_s17, 256  ;;  %p3201_p0 = scmp.lt.s32.totalorder %s4287_s26, %s3199_s17 }
 0x3cf   : > { %p3202_p1 = scmp.lt.s32.totalorder %s3200_s20, %s3194_s18 }
 0x3d1   : > { %p3203_p2 = por %p3202_p1, %p3201_p0 }
 0x3d3   : > { %p3204_p3 = pnand %p3203_p2, %p3197_p13 }
 0x43f   : > { %v2801_v20 = vpop.permute.xlu1 %2800  ;;  %v2795_v53 = vpop.permute.xlu0 %2794 }
 0x440   : > { %v2803_v24 = vsel %vm2579_vm12, %v2788_v16, %v2795_v53 }
 0x441   : > { %v2805_v61 = vsel %vm2804_vm4, %v2803_v24, %v2801_v20 }
 0x442   : > { %3105 = vmatmul.mubr.msk.f32.vlgmr.msra.gmra.mrb[0].mxu0 %vm2825_vm5, %v2805_v61 }
 0x515   : > { %v2895_v22 = vpop.f32.mrb[0].mxu0 }
 0x516   : > { %v2896_v29 = vadd.f32 %v3018_v25, %v2895_v22  ;;  %v3106_v34 = vpop.f32.mrb[1].mxu0 }
 0x518   : > { %2899 = vst.msk [vmem:[%s305_s24] sm:$0xff] %vm2579_vm12, %v2896_v29 }
 0x519   : > { %3207 = shalt.err (!%p3204_p3)
}
 0x51a   : > { %s3208_s19 = scalar_lea.hbm %s4285_s10, 128  ;;  %s3212_s23 = scalar_lea.hbm %s4336_s8, 256 }
 0x51b   : > { %p3209_p4 = scmp.ne.s32.totalorder %s4285_s10, %s3208_s19  ;;  %p3213_p9 = scmp.lt.u32.totalorder %s4285_s10, %s4336_s8 }
 0x51c   : > { %p3214_p10 = scmp.lt.u32.totalorder %s3212_s23, %s3208_s19  ;;  %p3216_p12 = scmp.lt.u32.totalorder %s3208_s19, %s4285_s10 }
 0x51d   : > { %p3210_p7 = pnand %p3209_p4, %p3355_p5 }
 0x51e   : > { %p3215_p11 = por %p3214_p10, %p3213_p9 }
 0x51f   : > { %p3211_p8 = pneg %p3210_p7 }
 0x520   : > { %p3217_p13 = por %p3216_p12, %p3215_p11 }
 0x522   : > { %p3218_p0 = pnand %p3217_p13, %p3211_p8 }
 0x524   : > { %3221 = shalt.err (!%p3218_p0)
}
 0x525   : > { %3142 = dma.vmem_to_hbm [thread:$0]  (%p3355_p5), %s4287_s26, 128, %s4285_s10, %s2905_s12  }
 0x526 PF: > { %p3148_p1 = scmp.ge.s32.totalorder %s3256_s30, 2  ;;  %s2940_s25 = sand.u32 1, %s3244_s27  }
 0x527   : > { %s2941_s18 = scalar_lea.sflag [#allocation3], %s2940_s25 }
 0x528   : > { %p3145_p2 = pnand %p3148_p1, %p3359_p6 }
 0x52a   : > { %3239 = dma.done.wait (!%p3145_p2), %s2941_s18, 128  }
 0x52b   : > { %3241 = vsyncadd (!%p3145_p2), %s2941_s18, 4294967168  ;;  %p19_p3 = scmp.ge.s32.totalorder %s3342_s11, 4   ;;  %s4378_s27 = smov %s3248_s28 }
 0x52c   : > { %s4379_s28 = smov %s3252_s29  ;;  %s4380_s29 = smov %s3353_s14 }
 0x52d   : > { %s4381_s30 = smov %s3342_s11  ;;  %21 = sbr.rel (!%p19_p3) target bundleno = 3 (0x3), region = 95 }
 0x534   :  { %2946 = vsyncpa [#allocation3], 1 }
 0x535   :  { %2948 = vsyncpa [#allocation3 + $0x1], 1 }

</bundles_post_ra>
